<compile_context>
chip_gen: v7x
topology: tpu7x:2x2x1
jax: 0.10.0
libtpu: 0.0.40
codegen_flags: <defaults>
</compile_context>

<pallas_src>
import functools

import jax
import jax.numpy as jnp
from jax import lax
from jax.experimental import pallas as pl
from jax.experimental.pallas import tpu as pltpu

NUM_HEADS = 4
NEG_INF = -1e30
LN_EPS = 1e-5


def _layernorm(x, w, b):
    mu = jnp.mean(x, axis=-1, keepdims=True)
    var = jnp.mean(jnp.square(x - mu), axis=-1, keepdims=True)
    return (x - mu) * lax.rsqrt(var + LN_EPS) * w + b


# ----------------------------- fused Pallas kernel -----------------------------

def _fused_text_encoder_kernel(
        eos_ref,                                        # scalar prefetch (SMEM): (B,) int32
        prompts_ref, pos_ref, comp_ref,
        ln1w_ref, ln1b_ref, wqkv_ref, bqkv_ref, wo_ref, bo_ref,
        ln2w_ref, ln2b_ref, wfc_ref, bfc_ref, wproj_ref, bproj_ref,
        lnfw_ref, lnfb_ref, proj_ref,
        out_ref,
        x_ref, mask_ref, attn_ref,
        *, n_compound, n_ctx, num_heads, compute_dtype):
    bc = pl.program_id(0)           # batch chunk (parallel)
    l = pl.program_id(1)            # layer       (arbitrary / sequential)
    n_layers = pl.num_programs(1)
    BC, S, W = x_ref.shape
    D = W // num_heads
    scale = 1.0 / float(D) ** 0.5
    cdt = compute_dtype             # bf16 matmul operands, f32 everything else

    # ---- layer 0: init resident activations + causal mask (built once per chunk) ----
    @pl.when(l == 0)
    def _init():
        x_ref[...] = prompts_ref[...] + pos_ref[...]            # x = prompts + pos_emb
        row = lax.broadcasted_iota(jnp.int32, (S, S), 0)
        col = lax.broadcasted_iota(jnp.int32, (S, S), 1)
        mask_ref[...] = jnp.where(col <= row, 0.0, NEG_INF).astype(jnp.float32)

    # ---- MaPLe compound-prompt injection (tokens 1..1+n_ctx) before block l>=1 ----
    if n_compound > 0:
        @pl.when(jnp.logical_and(l >= 1, l <= n_compound))
        def _inject():
            ctx = comp_ref[0]                                   # (n_ctx, W)
            x_ref[:, pl.ds(1, n_ctx), :] = jnp.broadcast_to(ctx[None], (BC, n_ctx, W))

    x2 = x_ref[...].reshape(BC * S, W)                          # fold batch into matmul M

    # ---- pre-LN multi-head causal self-attention ----
    h = _layernorm(x2, ln1w_ref[0], ln1b_ref[0])                # f32
    qkv = jnp.dot(h.astype(cdt), wqkv_ref[0],
                  preferred_element_type=jnp.float32) + bqkv_ref[0]   # (BC*S, 3W) f32

    mask = mask_ref[...]
    # Per-head slices are taken directly from qkv (no full q/k/v copies); each head's
    # context is stored into its lane slice of attn_ref so per-head temporaries do not
    # stay live across the (small, static) head loop.
    for hh in range(num_heads):
        qh = qkv[:, 0 * W + hh * D: 0 * W + (hh + 1) * D].reshape(BC, S, D)
        kh = qkv[:, 1 * W + hh * D: 1 * W + (hh + 1) * D].reshape(BC, S, D)
        vh = qkv[:, 2 * W + hh * D: 2 * W + (hh + 1) * D].reshape(BC, S, D)
        s = jnp.einsum("bqd,bkd->bqk", qh.astype(cdt), kh.astype(cdt),
                       preferred_element_type=jnp.float32) * scale + mask[None]
        s = s - jnp.max(s, axis=-1, keepdims=True)
        p = jnp.exp(s)
        p = p * pl.reciprocal(jnp.sum(p, axis=-1, keepdims=True), approx=True)
        oh = jnp.einsum("bqk,bkd->bqd", p.astype(cdt), vh.astype(cdt),
                        preferred_element_type=jnp.float32)
        attn_ref[:, hh * D:(hh + 1) * D] = oh.reshape(BC * S, D)

    # single full-depth K=W out-projection (2 MXU passes instead of num_heads K=D passes)
    x2 = x2 + jnp.dot(attn_ref[...].astype(cdt), wo_ref[0],
                      preferred_element_type=jnp.float32) + bo_ref[0]

    # ---- MLP with QuickGELU (CLIP) ----
    # TODO(synk): for very large BC*S on v7x, tile FC->GELU->proj over row chunks to
    # bound the (BC*S, 4W) intermediate; bf16 cast before the proj matmul already halves it.
    h2 = _layernorm(x2, ln2w_ref[0], ln2b_ref[0])
    h2 = jnp.dot(h2.astype(cdt), wfc_ref[0],
                 preferred_element_type=jnp.float32) + bfc_ref[0]
    h2 = h2 * jax.nn.sigmoid(1.702 * h2)                        # QuickGELU in f32
    h2 = jnp.dot(h2.astype(cdt), wproj_ref[0],
                 preferred_element_type=jnp.float32) + bproj_ref[0]
    x2 = x2 + h2
    x_ref[...] = x2.reshape(BC, S, W)

    # ---- head at the last layer: ln_final(EOT rows) @ text_projection (all f32) ----
    @pl.when(l == n_layers - 1)
    def _head():
        rows = [x_ref[j, pl.ds(eos_ref[bc * BC + j], 1), :] for j in range(BC)]
        xe = jnp.concatenate(rows, axis=0) if BC > 1 else rows[0]      # (BC, W)
        he = _layernorm(xe, lnfw_ref[...], lnfb_ref[...])
        out_ref[0] = jnp.dot(he, proj_ref[...], preferred_element_type=jnp.float32)


# ----------------------------- wrapper -----------------------------

def text_encoder_forward(prompts, tokenized_prompts, compound_prompts_deeper_text, params,
                         compute_dtype=jnp.bfloat16):
    """TextEncoder.forward (dual=False path), fully fused into one pallas_call."""
    # TODO(synk): dual=True path (second text stream) not implemented.
    B, S, W = prompts.shape
    blocks = params["blocks"]
    L = len(blocks)
    E = params["text_projection"].shape[1]
    n_compound = len(compound_prompts_deeper_text)
    n_ctx = compound_prompts_deeper_text[0].shape[0] if n_compound else 1

    # Stack per-layer weights along a leading layer axis; streamed layer-by-layer by the
    # grid pipeline (double-buffered by BlockSpec).  Matmul weights in bf16 (compute_dtype),
    # LN params and biases stay f32.
    def stack(name, dtype):
        return jnp.stack([blk[name] for blk in blocks], axis=0).astype(dtype)

    stacked = [
        stack("ln1_w", jnp.float32), stack("ln1_b", jnp.float32),
        stack("wqkv", compute_dtype), stack("bqkv", jnp.float32),
        stack("wo", compute_dtype), stack("bo", jnp.float32),
        stack("ln2_w", jnp.float32), stack("ln2_b", jnp.float32),
        stack("wfc", compute_dtype), stack("bfc", jnp.float32),
        stack("wproj", compute_dtype), stack("bproj", jnp.float32),
    ]

    comp_stack = jnp.zeros((L, n_ctx, W), jnp.float32)
    if n_compound:
        comp_stack = comp_stack.at[1:1 + n_compound].set(
            jnp.stack(compound_prompts_deeper_text, axis=0).astype(jnp.float32))

    eos_idx = jnp.argmax(tokenized_prompts, axis=-1).astype(jnp.int32)

    # Generation-aware batch chunking: >1 chunk only on multi-TensorCore chips (v7x).
    # On single-TC v5e/v6e a second chunk would only re-stream the weight stack.
    kind = ""
    try:
        kind = jax.devices()[0].device_kind.lower()
    except Exception:
        pass
    multi_tc = ("v7" in kind) or ("7x" in kind)
    num_bc = 2 if (multi_tc and B >= 2 and B % 2 == 0) else 1
    BC = B // num_bc

    # Explicit scoped-VMEM limit: leave headroom under v7x's 64 MiB, ~100 MiB elsewhere.
    vmem_limit = (56 << 20) if multi_tc else (100 << 20)
    try:
        phys = pltpu.get_tpu_info().vmem_capacity_bytes
        vmem_limit = min(vmem_limit, int(phys * 7 // 8))
    except Exception:
        pass

    kernel = functools.partial(
        _fused_text_encoder_kernel, n_compound=n_compound, n_ctx=n_ctx,
        num_heads=NUM_HEADS, compute_dtype=compute_dtype)

    layer_specs = [pl.BlockSpec((1,) + w.shape[1:], lambda b, l, eos: (l, 0, 0))
                   for w in stacked]

    # Advisory cost estimate for XLA scheduling around the fused call.
    flops = int(L * B * (S * 24 * W * W + 4 * S * S * W) + 2 * B * W * E)
    transcendentals = int(L * B * (NUM_HEADS * S * S + S * 4 * W))
    bytes_accessed = int(sum(int(w.nbytes) for w in stacked) * num_bc
                         + prompts.nbytes + comp_stack.nbytes
                         + params["pos"].nbytes * num_bc
                         + params["text_projection"].nbytes + B * E * 4)

    out = pl.pallas_call(
        kernel,
        out_shape=jax.ShapeDtypeStruct((num_bc, BC, E), jnp.float32),
        grid_spec=pltpu.PrefetchScalarGridSpec(
            num_scalar_prefetch=1,
            grid=(num_bc, L),
            in_specs=[pl.BlockSpec((BC, S, W), lambda b, l, eos: (b, 0, 0)),      # prompts
                      pl.BlockSpec((1, S, W), lambda b, l, eos: (0, 0, 0)),       # pos emb
                      pl.BlockSpec((1, n_ctx, W), lambda b, l, eos: (l, 0, 0)),   # compound
                      *layer_specs,
                      pl.BlockSpec(params["ln_final_w"].shape, lambda b, l, eos: (0, 0)),
                      pl.BlockSpec(params["ln_final_b"].shape, lambda b, l, eos: (0, 0)),
                      pl.BlockSpec(params["text_projection"].shape, lambda b, l, eos: (0, 0))],
            out_specs=pl.BlockSpec((1, BC, E), lambda b, l, eos: (b, 0, 0)),
            scratch_shapes=[pltpu.VMEM((BC, S, W), jnp.float32),   # resident activations
                            pltpu.VMEM((S, S), jnp.float32),       # causal mask (built once)
                            pltpu.VMEM((BC * S, W), jnp.float32)]),  # concatenated head ctx
        compiler_params=pltpu.CompilerParams(
            dimension_semantics=("parallel", "arbitrary"),
            vmem_limit_bytes=vmem_limit),
        cost_estimate=pl.CostEstimate(flops=flops, transcendentals=transcendentals,
                                      bytes_accessed=bytes_accessed),
    )(eos_idx, prompts, params["pos"], comp_stack, *stacked,
      params["ln_final_w"], params["ln_final_b"], params["text_projection"])
    return out.reshape(B, E)


# ----------------------------- reference (plain JAX, f32) -----------------------------

def reference_forward(prompts, tokenized_prompts, compound, params):
    x = prompts + params["pos"]
    B, S, W = x.shape
    D = W // NUM_HEADS
    scale = 1.0 / (D ** 0.5)
    row = lax.broadcasted_iota(jnp.int32, (S, S), 0)
    col = lax.broadcasted_iota(jnp.int32, (S, S), 1)
    causal = jnp.where(col <= row, 0.0, NEG_INF).astype(jnp.float32)
    n_ctx = compound[0].shape[0] if compound else 0
    for i, blk in enumerate(params["blocks"]):
        if i > 0 and (i - 1) < len(compound):
            ctx = jnp.broadcast_to(compound[i - 1][None], (B, n_ctx, W))
            x = jnp.concatenate([x[:, :1], ctx, x[:, 1 + n_ctx:]], axis=1)
        h = _layernorm(x, blk["ln1_w"], blk["ln1_b"])
        qkv = h @ blk["wqkv"] + blk["bqkv"]
        q, k, v = jnp.split(qkv, 3, axis=-1)
        q = q.reshape(B, S, NUM_HEADS, D).transpose(0, 2, 1, 3)
        k = k.reshape(B, S, NUM_HEADS, D).transpose(0, 2, 1, 3)
        v = v.reshape(B, S, NUM_HEADS, D).transpose(0, 2, 1, 3)
        s = jnp.einsum("bhqd,bhkd->bhqk", q, k) * scale + causal
        p = jax.nn.softmax(s, axis=-1)
        a = jnp.einsum("bhqk,bhkd->bhqd", p, v).transpose(0, 2, 1, 3).reshape(B, S, W)
        x = x + a @ blk["wo"] + blk["bo"]
        h2 = _layernorm(x, blk["ln2_w"], blk["ln2_b"])
        h2 = h2 @ blk["wfc"] + blk["bfc"]
        h2 = h2 * jax.nn.sigmoid(1.702 * h2)
        x = x + h2 @ blk["wproj"] + blk["bproj"]
    x = _layernorm(x, params["ln_final_w"], params["ln_final_b"])
    eos = jnp.argmax(tokenized_prompts, axis=-1)
    return x[jnp.arange(B), eos] @ params["text_projection"]


# ----------------------------- params -----------------------------

def init_params(key, S, W, E, n_layers):
    hidden = 4 * W

    def normal(k, shape, std=0.02):
        return std * jax.random.normal(k, shape, dtype=jnp.float32)

    keys = iter(jax.random.split(key, 12 * n_layers + 8))
    blocks = []
    for _ in range(n_layers):
        blocks.append(dict(
            ln1_w=1.0 + normal(next(keys), (1, W)),
            ln1_b=normal(next(keys), (1, W)),
            wqkv=normal(next(keys), (W, 3 * W)),
            bqkv=normal(next(keys), (1, 3 * W)),
            wo=normal(next(keys), (W, W)),
            bo=normal(next(keys), (1, W)),
            ln2_w=1.0 + normal(next(keys), (1, W)),
            ln2_b=normal(next(keys), (1, W)),
            wfc=normal(next(keys), (W, hidden)),
            bfc=normal(next(keys), (1, hidden)),
            wproj=normal(next(keys), (hidden, W)),
            bproj=normal(next(keys), (1, W)),
        ))
    return dict(
        pos=normal(next(keys), (1, S, W), std=0.01),
        blocks=blocks,
        ln_final_w=1.0 + normal(next(keys), (1, W)),
        ln_final_b=normal(next(keys), (1, W)),
        text_projection=normal(next(keys), (W, E)),
    )


if __name__ == "__main__":
    B, S, W, E = 2, 8, 32, 16
    N_LAYERS, N_CTX = 3, 2

    key = jax.random.PRNGKey(0)
    k_prompts, k_tok, k_cp, k_params = jax.random.split(key, 4)
    prompts = jax.random.normal(k_prompts, (B, S, W), dtype=jnp.float32)
    tokenized_prompts = jax.random.randint(k_tok, (B, S), 0, 100, dtype=jnp.int32)
    cp_keys = jax.random.split(k_cp, N_LAYERS - 1)
    compound_prompts = [jax.random.normal(cp_keys[i], (N_CTX, W), dtype=jnp.float32)
                        for i in range(N_LAYERS - 1)]
    params = init_params(k_params, S, W, E, N_LAYERS)

    ref = reference_forward(prompts, tokenized_prompts, compound_prompts, params)

    # exact-path check (f32 matmuls) at tight tolerance
    out_f32 = text_encoder_forward(prompts, tokenized_prompts, compound_prompts, params,
                                   compute_dtype=jnp.float32)
    out_f32 = jax.block_until_ready(out_f32)
    assert out_f32.shape == (B, E)
    assert bool(jnp.allclose(out_f32, ref, rtol=2e-3, atol=2e-3)), "f32 mismatch vs reference"

    # performance path (bf16 matmul operands, f32 accumulate/LN/softmax/residual)
    out_bf16 = text_encoder_forward(prompts, tokenized_prompts, compound_prompts, params)
    out_bf16 = jax.block_until_ready(out_bf16)
    assert out_bf16.shape == (B, E)
    assert bool(jnp.allclose(out_bf16, ref, rtol=2e-2, atol=2e-2)), "bf16 mismatch vs reference"

    print("KERNEL_OK")
</pallas_src>

<mosaic_0001>
module attributes {stable_mosaic.version = 11 : i64} {
  func.func @_fused_text_encoder_kernel(%arg0: i32, %arg1: i32, %arg2: memref<2xi32, #tpu.memory_space<smem>>, %arg3: memref<2x8x32xf32, #tpu.memory_space<vmem>>, %arg4: memref<1x8x32xf32, #tpu.memory_space<vmem>>, %arg5: memref<1x2x32xf32, #tpu.memory_space<vmem>>, %arg6: memref<1x1x32xf32, #tpu.memory_space<vmem>>, %arg7: memref<1x1x32xf32, #tpu.memory_space<vmem>>, %arg8: memref<1x32x96xf32, #tpu.memory_space<vmem>>, %arg9: memref<1x1x96xf32, #tpu.memory_space<vmem>>, %arg10: memref<1x32x32xf32, #tpu.memory_space<vmem>>, %arg11: memref<1x1x32xf32, #tpu.memory_space<vmem>>, %arg12: memref<1x1x32xf32, #tpu.memory_space<vmem>>, %arg13: memref<1x1x32xf32, #tpu.memory_space<vmem>>, %arg14: memref<1x32x128xf32, #tpu.memory_space<vmem>>, %arg15: memref<1x1x128xf32, #tpu.memory_space<vmem>>, %arg16: memref<1x128x32xf32, #tpu.memory_space<vmem>>, %arg17: memref<1x1x32xf32, #tpu.memory_space<vmem>>, %arg18: memref<1x32xf32, #tpu.memory_space<vmem>>, %arg19: memref<1x32xf32, #tpu.memory_space<vmem>>, %arg20: memref<32x16xf32, #tpu.memory_space<vmem>>, %arg21: memref<1x2x16xf32, #tpu.memory_space<vmem>>, %arg22: memref<2x8x32xf32, #tpu.memory_space<vmem>>, %arg23: memref<8x8xf32, #tpu.memory_space<vmem>>, %arg24: memref<16x32xf32, #tpu.memory_space<vmem>>) attributes {dimension_semantics = [#tpu.dimension_semantics<parallel>, #tpu.dimension_semantics<arbitrary>], iteration_bounds = array<i64: 1, 3>, scalar_prefetch = 1 : i64, scratch_operands = 3 : i64, tpu.core_type = #tpu.core_type<tc>, window_params = [{transform_indices = @transform_0, window_bounds = array<i64: 2, 8, 32>}, {pipeline_mode = #tpu.pipeline_mode<synchronous>, transform_indices = @transform_1, window_bounds = array<i64: 1, 8, 32>}, {transform_indices = @transform_2, window_bounds = array<i64: 1, 2, 32>}, {transform_indices = @transform_3, window_bounds = array<i64: 1, 1, 32>}, {transform_indices = @transform_4, window_bounds = array<i64: 1, 1, 32>}, {transform_indices = @transform_5, window_bounds = array<i64: 1, 32, 96>}, {transform_indices = @transform_6, window_bounds = array<i64: 1, 1, 96>}, {transform_indices = @transform_7, window_bounds = array<i64: 1, 32, 32>}, {transform_indices = @transform_8, window_bounds = array<i64: 1, 1, 32>}, {transform_indices = @transform_9, window_bounds = array<i64: 1, 1, 32>}, {transform_indices = @transform_10, window_bounds = array<i64: 1, 1, 32>}, {transform_indices = @transform_11, window_bounds = array<i64: 1, 32, 128>}, {transform_indices = @transform_12, window_bounds = array<i64: 1, 1, 128>}, {transform_indices = @transform_13, window_bounds = array<i64: 1, 128, 32>}, {transform_indices = @transform_14, window_bounds = array<i64: 1, 1, 32>}, {pipeline_mode = #tpu.pipeline_mode<synchronous>, transform_indices = @transform_15, window_bounds = array<i64: 1, 32>}, {pipeline_mode = #tpu.pipeline_mode<synchronous>, transform_indices = @transform_16, window_bounds = array<i64: 1, 32>}, {pipeline_mode = #tpu.pipeline_mode<synchronous>, transform_indices = @transform_17, window_bounds = array<i64: 32, 16>}, {transform_indices = @transform_18, window_bounds = array<i64: 1, 2, 16>}]} {
    %c0_i32 = arith.constant 0 : i32
    %0 = arith.cmpi eq, %arg1, %c0_i32 : i32
    %1 = arith.extui %0 : i1 to i32
    %c0_i32_0 = arith.constant 0 : i32
    %2 = arith.cmpi ne, %1, %c0_i32_0 : i32
    scf.if %2 {
      %c0_89 = arith.constant 0 : index
      %c0_90 = arith.constant 0 : index
      %c0_91 = arith.constant 0 : index
      %207 = vector.load %arg3[%c0_89, %c0_90, %c0_91] : memref<2x8x32xf32, #tpu.memory_space<vmem>>, vector<2x8x32xf32>
      %c0_92 = arith.constant 0 : index
      %c0_93 = arith.constant 0 : index
      %c0_94 = arith.constant 0 : index
      %208 = vector.load %arg4[%c0_92, %c0_93, %c0_94] : memref<1x8x32xf32, #tpu.memory_space<vmem>>, vector<1x8x32xf32>
      %209 = vector.broadcast %208 : vector<1x8x32xf32> to vector<2x8x32xf32>
      %210 = arith.addf %207, %209 : vector<2x8x32xf32>
      %c0_95 = arith.constant 0 : index
      %c0_96 = arith.constant 0 : index
      %c0_97 = arith.constant 0 : index
      %211 = vector.load %arg22[%c0_95, %c0_96, %c0_97] : memref<2x8x32xf32, #tpu.memory_space<vmem>>, vector<2x8x32xf32>
      tpu.vector_store %arg22[%c0_95, %c0_96, %c0_97], %210 {strides = array<i32>} : memref<2x8x32xf32, #tpu.memory_space<vmem>>, vector<2x8x32xf32>,
      %212 = tpu.iota {dimensions = array<i32: 0>} : vector<8x8xi32>
      %213 = tpu.iota {dimensions = array<i32: 1>} : vector<8x8xi32>
      %214 = arith.cmpi sle, %213, %212 : vector<8x8xi32>
      %cst_98 = arith.constant 0.000000e+00 : f32
      %cst_99 = arith.constant -1.000000e+30 : f32
      %215 = vector.broadcast %cst_98 : f32 to vector<8x8xf32>
      %216 = vector.broadcast %cst_99 : f32 to vector<8x8xf32>
      %217 = arith.select %214, %215, %216 : vector<8x8xi1>, vector<8x8xf32>
      %c0_100 = arith.constant 0 : index
      %c0_101 = arith.constant 0 : index
      %218 = vector.load %arg23[%c0_100, %c0_101] : memref<8x8xf32, #tpu.memory_space<vmem>>, vector<8x8xf32>
      tpu.vector_store %arg23[%c0_100, %c0_101], %217 {strides = array<i32>} : memref<8x8xf32, #tpu.memory_space<vmem>>, vector<8x8xf32>,
    } else {
    }
    %c1_i32 = arith.constant 1 : i32
    %3 = arith.cmpi sge, %arg1, %c1_i32 : i32
    %c2_i32 = arith.constant 2 : i32
    %4 = arith.cmpi sle, %arg1, %c2_i32 : i32
    %5 = arith.andi %3, %4 : i1
    %6 = arith.extui %5 : i1 to i32
    %c0_i32_1 = arith.constant 0 : i32
    %7 = arith.cmpi ne, %6, %c0_i32_1 : i32
    scf.if %7 {
      %c0_89 = arith.constant 0 : index
      %c0_90 = arith.constant 0 : index
      %c0_91 = arith.constant 0 : index
      %207 = vector.load %arg5[%c0_89, %c0_90, %c0_91] : memref<1x2x32xf32, #tpu.memory_space<vmem>>, vector<1x2x32xf32>
      %208 = vector.shape_cast %207 : vector<1x2x32xf32> to vector<2x32xf32>
      %209 = vector.shape_cast %208 : vector<2x32xf32> to vector<1x2x32xf32>
      %210 = vector.shape_cast %209 : vector<1x2x32xf32> to vector<1x2x32xf32>
      %211 = vector.broadcast %210 : vector<1x2x32xf32> to vector<2x2x32xf32>
      %c0_92 = arith.constant 0 : index
      %c1 = arith.constant 1 : index
      %c0_93 = arith.constant 0 : index
      %212 = vector.load %arg22[%c0_92, %c1, %c0_93] : memref<2x8x32xf32, #tpu.memory_space<vmem>>, vector<2x2x32xf32>
      tpu.vector_store %arg22[%c0_92, %c1, %c0_93], %211 {strides = array<i32>} : memref<2x8x32xf32, #tpu.memory_space<vmem>>, vector<2x2x32xf32>,
    } else {
    }
    %c0 = arith.constant 0 : index
    %c0_2 = arith.constant 0 : index
    %c0_3 = arith.constant 0 : index
    %8 = vector.load %arg22[%c0, %c0_2, %c0_3] : memref<2x8x32xf32, #tpu.memory_space<vmem>>, vector<2x8x32xf32>
    %9 = vector.shape_cast %8 : vector<2x8x32xf32> to vector<16x32xf32>
    %c0_4 = arith.constant 0 : index
    %c0_5 = arith.constant 0 : index
    %c0_6 = arith.constant 0 : index
    %10 = vector.load %arg6[%c0_4, %c0_5, %c0_6] : memref<1x1x32xf32, #tpu.memory_space<vmem>>, vector<1x1x32xf32>
    %11 = vector.shape_cast %10 : vector<1x1x32xf32> to vector<1x32xf32>
    %c0_7 = arith.constant 0 : index
    %c0_8 = arith.constant 0 : index
    %c0_9 = arith.constant 0 : index
    %12 = vector.load %arg7[%c0_7, %c0_8, %c0_9] : memref<1x1x32xf32, #tpu.memory_space<vmem>>, vector<1x1x32xf32>
    %13 = vector.shape_cast %12 : vector<1x1x32xf32> to vector<1x32xf32>
    %cst = arith.constant dense<0.000000e+00> : vector<16xf32>
    %14 = vector.multi_reduction <add>, %9, %cst [1] : vector<16x32xf32> to vector<16xf32>
    %15 = vector.shape_cast %14 : vector<16xf32> to vector<16x1xf32>
    %cst_10 = arith.constant 3.200000e+01 : f32
    %16 = vector.broadcast %cst_10 : f32 to vector<16x1xf32>
    %17 = arith.divf %15, %16 : vector<16x1xf32>
    %18 = vector.broadcast %17 : vector<16x1xf32> to vector<16x32xf32>
    %19 = arith.subf %9, %18 : vector<16x32xf32>
    %20 = arith.mulf %19, %19 : vector<16x32xf32>
    %cst_11 = arith.constant dense<0.000000e+00> : vector<16xf32>
    %21 = vector.multi_reduction <add>, %20, %cst_11 [1] : vector<16x32xf32> to vector<16xf32>
    %22 = vector.shape_cast %21 : vector<16xf32> to vector<16x1xf32>
    %cst_12 = arith.constant 3.200000e+01 : f32
    %23 = vector.broadcast %cst_12 : f32 to vector<16x1xf32>
    %24 = arith.divf %22, %23 : vector<16x1xf32>
    %25 = vector.broadcast %17 : vector<16x1xf32> to vector<16x32xf32>
    %26 = arith.subf %9, %25 : vector<16x32xf32>
    %cst_13 = arith.constant 9.99999974E-6 : f32
    %27 = vector.broadcast %cst_13 : f32 to vector<16x1xf32>
    %28 = arith.addf %24, %27 : vector<16x1xf32>
    %29 = math.rsqrt %28 : vector<16x1xf32>
    %30 = vector.broadcast %29 : vector<16x1xf32> to vector<16x32xf32>
    %31 = arith.mulf %26, %30 : vector<16x32xf32>
    %32 = vector.broadcast %11 : vector<1x32xf32> to vector<16x32xf32>
    %33 = arith.mulf %31, %32 : vector<16x32xf32>
    %34 = vector.broadcast %13 : vector<1x32xf32> to vector<16x32xf32>
    %35 = arith.addf %33, %34 : vector<16x32xf32>
    %c0_14 = arith.constant 0 : index
    %c0_15 = arith.constant 0 : index
    %c0_16 = arith.constant 0 : index
    %36 = vector.load %arg8[%c0_14, %c0_15, %c0_16] : memref<1x32x96xf32, #tpu.memory_space<vmem>>, vector<1x32x96xf32>
    %37 = vector.shape_cast %36 : vector<1x32x96xf32> to vector<32x96xf32>
    %cst_17 = arith.constant dense<0.000000e+00> : vector<16x96xf32>
    %38 = tpu.matmul %35, %37, %cst_17 {dimension_numbers = #tpu.dot_dimension_numbers<[1], [0], [0], [1], [0, 0, 1, 1], [], []>} : vector<16x32xf32>, vector<32x96xf32>, vector<16x96xf32> -> vector<16x96xf32>
    %c0_18 = arith.constant 0 : index
    %c0_19 = arith.constant 0 : index
    %c0_20 = arith.constant 0 : index
    %39 = vector.load %arg9[%c0_18, %c0_19, %c0_20] : memref<1x1x96xf32, #tpu.memory_space<vmem>>, vector<1x1x96xf32>
    %40 = vector.shape_cast %39 : vector<1x1x96xf32> to vector<1x96xf32>
    %41 = vector.broadcast %40 : vector<1x96xf32> to vector<16x96xf32>
    %42 = arith.addf %38, %41 : vector<16x96xf32>
    %c0_21 = arith.constant 0 : index
    %c0_22 = arith.constant 0 : index
    %43 = vector.load %arg23[%c0_21, %c0_22] : memref<8x8xf32, #tpu.memory_space<vmem>>, vector<8x8xf32>
    %44 = vector.extract_strided_slice %42 {offsets = [0, 0], sizes = [16, 8], strides = [1, 1]} : vector<16x96xf32> to vector<16x8xf32>
    %45 = vector.shape_cast %44 : vector<16x8xf32> to vector<2x8x8xf32>
    %46 = vector.extract_strided_slice %42 {offsets = [0, 32], sizes = [16, 8], strides = [1, 1]} : vector<16x96xf32> to vector<16x8xf32>
    %47 = vector.shape_cast %46 : vector<16x8xf32> to vector<2x8x8xf32>
    %48 = vector.extract_strided_slice %42 {offsets = [0, 64], sizes = [16, 8], strides = [1, 1]} : vector<16x96xf32> to vector<16x8xf32>
    %49 = vector.shape_cast %48 : vector<16x8xf32> to vector<2x8x8xf32>
    "tpu.trace_start"() <{level = 10 : i32, message = "bqd,bkd->bqk"}> : () -> ()
    %cst_23 = arith.constant dense<0.000000e+00> : vector<2x8x8xf32>
    %50 = tpu.matmul %45, %47, %cst_23 {dimension_numbers = #tpu.dot_dimension_numbers<[2], [2], [1], [1], [0, 0, 0, 1, 1, 1], [0], [0]>} : vector<2x8x8xf32>, vector<2x8x8xf32>, vector<2x8x8xf32> -> vector<2x8x8xf32>
    "tpu.trace_stop"() : () -> ()
    %cst_24 = arith.constant 0.353553385 : f32
    %51 = vector.broadcast %cst_24 : f32 to vector<2x8x8xf32>
    %52 = arith.mulf %50, %51 : vector<2x8x8xf32>
    %53 = vector.shape_cast %43 : vector<8x8xf32> to vector<1x8x8xf32>
    %54 = vector.broadcast %53 : vector<1x8x8xf32> to vector<2x8x8xf32>
    %55 = arith.addf %52, %54 : vector<2x8x8xf32>
    %cst_25 = arith.constant dense<0xFF800000> : vector<2x8xf32>
    %56 = vector.multi_reduction <maximumf>, %55, %cst_25 [2] : vector<2x8x8xf32> to vector<2x8xf32>
    %57 = vector.shape_cast %56 : vector<2x8xf32> to vector<2x8x1xf32>
    %58 = vector.broadcast %57 : vector<2x8x1xf32> to vector<2x8x8xf32>
    %59 = arith.subf %55, %58 : vector<2x8x8xf32>
    %60 = math.exp %59 : vector<2x8x8xf32>
    %cst_26 = arith.constant dense<0.000000e+00> : vector<2x8xf32>
    %61 = vector.multi_reduction <add>, %60, %cst_26 [2] : vector<2x8x8xf32> to vector<2x8xf32>
    %62 = vector.shape_cast %61 : vector<2x8xf32> to vector<2x8x1xf32>
    %63 = tpu.reciprocal %62 {approx = true} : vector<2x8x1xf32> -> vector<2x8x1xf32>
    %64 = vector.broadcast %63 : vector<2x8x1xf32> to vector<2x8x8xf32>
    %65 = arith.mulf %60, %64 : vector<2x8x8xf32>
    "tpu.trace_start"() <{level = 10 : i32, message = "bqk,bkd->bqd"}> : () -> ()
    %cst_27 = arith.constant dense<0.000000e+00> : vector<2x8x8xf32>
    %66 = tpu.matmul %65, %49, %cst_27 {dimension_numbers = #tpu.dot_dimension_numbers<[2], [1], [1], [2], [0, 0, 0, 1, 1, 2], [0], [0]>} : vector<2x8x8xf32>, vector<2x8x8xf32>, vector<2x8x8xf32> -> vector<2x8x8xf32>
    "tpu.trace_stop"() : () -> ()
    %67 = vector.shape_cast %66 : vector<2x8x8xf32> to vector<16x8xf32>
    %c0_28 = arith.constant 0 : index
    %c0_29 = arith.constant 0 : index
    %68 = vector.load %arg24[%c0_28, %c0_29] : memref<16x32xf32, #tpu.memory_space<vmem>>, vector<16x8xf32>
    tpu.vector_store %arg24[%c0_28, %c0_29], %67 {strides = array<i32>} : memref<16x32xf32, #tpu.memory_space<vmem>>, vector<16x8xf32>,
    %69 = vector.extract_strided_slice %42 {offsets = [0, 8], sizes = [16, 8], strides = [1, 1]} : vector<16x96xf32> to vector<16x8xf32>
    %70 = vector.shape_cast %69 : vector<16x8xf32> to vector<2x8x8xf32>
    %71 = vector.extract_strided_slice %42 {offsets = [0, 40], sizes = [16, 8], strides = [1, 1]} : vector<16x96xf32> to vector<16x8xf32>
    %72 = vector.shape_cast %71 : vector<16x8xf32> to vector<2x8x8xf32>
    %73 = vector.extract_strided_slice %42 {offsets = [0, 72], sizes = [16, 8], strides = [1, 1]} : vector<16x96xf32> to vector<16x8xf32>
    %74 = vector.shape_cast %73 : vector<16x8xf32> to vector<2x8x8xf32>
    "tpu.trace_start"() <{level = 10 : i32, message = "bqd,bkd->bqk"}> : () -> ()
    %cst_30 = arith.constant dense<0.000000e+00> : vector<2x8x8xf32>
    %75 = tpu.matmul %70, %72, %cst_30 {dimension_numbers = #tpu.dot_dimension_numbers<[2], [2], [1], [1], [0, 0, 0, 1, 1, 1], [0], [0]>} : vector<2x8x8xf32>, vector<2x8x8xf32>, vector<2x8x8xf32> -> vector<2x8x8xf32>
    "tpu.trace_stop"() : () -> ()
    %cst_31 = arith.constant 0.353553385 : f32
    %76 = vector.broadcast %cst_31 : f32 to vector<2x8x8xf32>
    %77 = arith.mulf %75, %76 : vector<2x8x8xf32>
    %78 = vector.shape_cast %43 : vector<8x8xf32> to vector<1x8x8xf32>
    %79 = vector.broadcast %78 : vector<1x8x8xf32> to vector<2x8x8xf32>
    %80 = arith.addf %77, %79 : vector<2x8x8xf32>
    %cst_32 = arith.constant dense<0xFF800000> : vector<2x8xf32>
    %81 = vector.multi_reduction <maximumf>, %80, %cst_32 [2] : vector<2x8x8xf32> to vector<2x8xf32>
    %82 = vector.shape_cast %81 : vector<2x8xf32> to vector<2x8x1xf32>
    %83 = vector.broadcast %82 : vector<2x8x1xf32> to vector<2x8x8xf32>
    %84 = arith.subf %80, %83 : vector<2x8x8xf32>
    %85 = math.exp %84 : vector<2x8x8xf32>
    %cst_33 = arith.constant dense<0.000000e+00> : vector<2x8xf32>
    %86 = vector.multi_reduction <add>, %85, %cst_33 [2] : vector<2x8x8xf32> to vector<2x8xf32>
    %87 = vector.shape_cast %86 : vector<2x8xf32> to vector<2x8x1xf32>
    %88 = tpu.reciprocal %87 {approx = true} : vector<2x8x1xf32> -> vector<2x8x1xf32>
    %89 = vector.broadcast %88 : vector<2x8x1xf32> to vector<2x8x8xf32>
    %90 = arith.mulf %85, %89 : vector<2x8x8xf32>
    "tpu.trace_start"() <{level = 10 : i32, message = "bqk,bkd->bqd"}> : () -> ()
    %cst_34 = arith.constant dense<0.000000e+00> : vector<2x8x8xf32>
    %91 = tpu.matmul %90, %74, %cst_34 {dimension_numbers = #tpu.dot_dimension_numbers<[2], [1], [1], [2], [0, 0, 0, 1, 1, 2], [0], [0]>} : vector<2x8x8xf32>, vector<2x8x8xf32>, vector<2x8x8xf32> -> vector<2x8x8xf32>
    "tpu.trace_stop"() : () -> ()
    %92 = vector.shape_cast %91 : vector<2x8x8xf32> to vector<16x8xf32>
    %c0_35 = arith.constant 0 : index
    %c8 = arith.constant 8 : index
    %93 = vector.load %arg24[%c0_35, %c8] : memref<16x32xf32, #tpu.memory_space<vmem>>, vector<16x8xf32>
    tpu.vector_store %arg24[%c0_35, %c8], %92 {strides = array<i32>} : memref<16x32xf32, #tpu.memory_space<vmem>>, vector<16x8xf32>,
    %94 = vector.extract_strided_slice %42 {offsets = [0, 16], sizes = [16, 8], strides = [1, 1]} : vector<16x96xf32> to vector<16x8xf32>
    %95 = vector.shape_cast %94 : vector<16x8xf32> to vector<2x8x8xf32>
    %96 = vector.extract_strided_slice %42 {offsets = [0, 48], sizes = [16, 8], strides = [1, 1]} : vector<16x96xf32> to vector<16x8xf32>
    %97 = vector.shape_cast %96 : vector<16x8xf32> to vector<2x8x8xf32>
    %98 = vector.extract_strided_slice %42 {offsets = [0, 80], sizes = [16, 8], strides = [1, 1]} : vector<16x96xf32> to vector<16x8xf32>
    %99 = vector.shape_cast %98 : vector<16x8xf32> to vector<2x8x8xf32>
    "tpu.trace_start"() <{level = 10 : i32, message = "bqd,bkd->bqk"}> : () -> ()
    %cst_36 = arith.constant dense<0.000000e+00> : vector<2x8x8xf32>
    %100 = tpu.matmul %95, %97, %cst_36 {dimension_numbers = #tpu.dot_dimension_numbers<[2], [2], [1], [1], [0, 0, 0, 1, 1, 1], [0], [0]>} : vector<2x8x8xf32>, vector<2x8x8xf32>, vector<2x8x8xf32> -> vector<2x8x8xf32>
    "tpu.trace_stop"() : () -> ()
    %cst_37 = arith.constant 0.353553385 : f32
    %101 = vector.broadcast %cst_37 : f32 to vector<2x8x8xf32>
    %102 = arith.mulf %100, %101 : vector<2x8x8xf32>
    %103 = vector.shape_cast %43 : vector<8x8xf32> to vector<1x8x8xf32>
    %104 = vector.broadcast %103 : vector<1x8x8xf32> to vector<2x8x8xf32>
    %105 = arith.addf %102, %104 : vector<2x8x8xf32>
    %cst_38 = arith.constant dense<0xFF800000> : vector<2x8xf32>
    %106 = vector.multi_reduction <maximumf>, %105, %cst_38 [2] : vector<2x8x8xf32> to vector<2x8xf32>
    %107 = vector.shape_cast %106 : vector<2x8xf32> to vector<2x8x1xf32>
    %108 = vector.broadcast %107 : vector<2x8x1xf32> to vector<2x8x8xf32>
    %109 = arith.subf %105, %108 : vector<2x8x8xf32>
    %110 = math.exp %109 : vector<2x8x8xf32>
    %cst_39 = arith.constant dense<0.000000e+00> : vector<2x8xf32>
    %111 = vector.multi_reduction <add>, %110, %cst_39 [2] : vector<2x8x8xf32> to vector<2x8xf32>
    %112 = vector.shape_cast %111 : vector<2x8xf32> to vector<2x8x1xf32>
    %113 = tpu.reciprocal %112 {approx = true} : vector<2x8x1xf32> -> vector<2x8x1xf32>
    %114 = vector.broadcast %113 : vector<2x8x1xf32> to vector<2x8x8xf32>
    %115 = arith.mulf %110, %114 : vector<2x8x8xf32>
    "tpu.trace_start"() <{level = 10 : i32, message = "bqk,bkd->bqd"}> : () -> ()
    %cst_40 = arith.constant dense<0.000000e+00> : vector<2x8x8xf32>
    %116 = tpu.matmul %115, %99, %cst_40 {dimension_numbers = #tpu.dot_dimension_numbers<[2], [1], [1], [2], [0, 0, 0, 1, 1, 2], [0], [0]>} : vector<2x8x8xf32>, vector<2x8x8xf32>, vector<2x8x8xf32> -> vector<2x8x8xf32>
    "tpu.trace_stop"() : () -> ()
    %117 = vector.shape_cast %116 : vector<2x8x8xf32> to vector<16x8xf32>
    %c0_41 = arith.constant 0 : index
    %c16 = arith.constant 16 : index
    %118 = vector.load %arg24[%c0_41, %c16] : memref<16x32xf32, #tpu.memory_space<vmem>>, vector<16x8xf32>
    tpu.vector_store %arg24[%c0_41, %c16], %117 {strides = array<i32>} : memref<16x32xf32, #tpu.memory_space<vmem>>, vector<16x8xf32>,
    %119 = vector.extract_strided_slice %42 {offsets = [0, 24], sizes = [16, 8], strides = [1, 1]} : vector<16x96xf32> to vector<16x8xf32>
    %120 = vector.shape_cast %119 : vector<16x8xf32> to vector<2x8x8xf32>
    %121 = vector.extract_strided_slice %42 {offsets = [0, 56], sizes = [16, 8], strides = [1, 1]} : vector<16x96xf32> to vector<16x8xf32>
    %122 = vector.shape_cast %121 : vector<16x8xf32> to vector<2x8x8xf32>
    %123 = vector.extract_strided_slice %42 {offsets = [0, 88], sizes = [16, 8], strides = [1, 1]} : vector<16x96xf32> to vector<16x8xf32>
    %124 = vector.shape_cast %123 : vector<16x8xf32> to vector<2x8x8xf32>
    "tpu.trace_start"() <{level = 10 : i32, message = "bqd,bkd->bqk"}> : () -> ()
    %cst_42 = arith.constant dense<0.000000e+00> : vector<2x8x8xf32>
    %125 = tpu.matmul %120, %122, %cst_42 {dimension_numbers = #tpu.dot_dimension_numbers<[2], [2], [1], [1], [0, 0, 0, 1, 1, 1], [0], [0]>} : vector<2x8x8xf32>, vector<2x8x8xf32>, vector<2x8x8xf32> -> vector<2x8x8xf32>
    "tpu.trace_stop"() : () -> ()
    %cst_43 = arith.constant 0.353553385 : f32
    %126 = vector.broadcast %cst_43 : f32 to vector<2x8x8xf32>
    %127 = arith.mulf %125, %126 : vector<2x8x8xf32>
    %128 = vector.shape_cast %43 : vector<8x8xf32> to vector<1x8x8xf32>
    %129 = vector.broadcast %128 : vector<1x8x8xf32> to vector<2x8x8xf32>
    %130 = arith.addf %127, %129 : vector<2x8x8xf32>
    %cst_44 = arith.constant dense<0xFF800000> : vector<2x8xf32>
    %131 = vector.multi_reduction <maximumf>, %130, %cst_44 [2] : vector<2x8x8xf32> to vector<2x8xf32>
    %132 = vector.shape_cast %131 : vector<2x8xf32> to vector<2x8x1xf32>
    %133 = vector.broadcast %132 : vector<2x8x1xf32> to vector<2x8x8xf32>
    %134 = arith.subf %130, %133 : vector<2x8x8xf32>
    %135 = math.exp %134 : vector<2x8x8xf32>
    %cst_45 = arith.constant dense<0.000000e+00> : vector<2x8xf32>
    %136 = vector.multi_reduction <add>, %135, %cst_45 [2] : vector<2x8x8xf32> to vector<2x8xf32>
    %137 = vector.shape_cast %136 : vector<2x8xf32> to vector<2x8x1xf32>
    %138 = tpu.reciprocal %137 {approx = true} : vector<2x8x1xf32> -> vector<2x8x1xf32>
    %139 = vector.broadcast %138 : vector<2x8x1xf32> to vector<2x8x8xf32>
    %140 = arith.mulf %135, %139 : vector<2x8x8xf32>
    "tpu.trace_start"() <{level = 10 : i32, message = "bqk,bkd->bqd"}> : () -> ()
    %cst_46 = arith.constant dense<0.000000e+00> : vector<2x8x8xf32>
    %141 = tpu.matmul %140, %124, %cst_46 {dimension_numbers = #tpu.dot_dimension_numbers<[2], [1], [1], [2], [0, 0, 0, 1, 1, 2], [0], [0]>} : vector<2x8x8xf32>, vector<2x8x8xf32>, vector<2x8x8xf32> -> vector<2x8x8xf32>
    "tpu.trace_stop"() : () -> ()
    %142 = vector.shape_cast %141 : vector<2x8x8xf32> to vector<16x8xf32>
    %c0_47 = arith.constant 0 : index
    %c24 = arith.constant 24 : index
    %143 = vector.load %arg24[%c0_47, %c24] : memref<16x32xf32, #tpu.memory_space<vmem>>, vector<16x8xf32>
    tpu.vector_store %arg24[%c0_47, %c24], %142 {strides = array<i32>} : memref<16x32xf32, #tpu.memory_space<vmem>>, vector<16x8xf32>,
    %c0_48 = arith.constant 0 : index
    %c0_49 = arith.constant 0 : index
    %144 = vector.load %arg24[%c0_48, %c0_49] : memref<16x32xf32, #tpu.memory_space<vmem>>, vector<16x32xf32>
    %c0_50 = arith.constant 0 : index
    %c0_51 = arith.constant 0 : index
    %c0_52 = arith.constant 0 : index
    %145 = vector.load %arg10[%c0_50, %c0_51, %c0_52] : memref<1x32x32xf32, #tpu.memory_space<vmem>>, vector<1x32x32xf32>
    %146 = vector.shape_cast %145 : vector<1x32x32xf32> to vector<32x32xf32>
    %cst_53 = arith.constant dense<0.000000e+00> : vector<16x32xf32>
    %147 = tpu.matmul %144, %146, %cst_53 {dimension_numbers = #tpu.dot_dimension_numbers<[1], [0], [0], [1], [0, 0, 1, 1], [], []>} : vector<16x32xf32>, vector<32x32xf32>, vector<16x32xf32> -> vector<16x32xf32>
    %148 = arith.addf %9, %147 : vector<16x32xf32>
    %c0_54 = arith.constant 0 : index
    %c0_55 = arith.constant 0 : index
    %c0_56 = arith.constant 0 : index
    %149 = vector.load %arg11[%c0_54, %c0_55, %c0_56] : memref<1x1x32xf32, #tpu.memory_space<vmem>>, vector<1x1x32xf32>
    %150 = vector.shape_cast %149 : vector<1x1x32xf32> to vector<1x32xf32>
    %151 = vector.broadcast %150 : vector<1x32xf32> to vector<16x32xf32>
    %152 = arith.addf %148, %151 : vector<16x32xf32>
    %c0_57 = arith.constant 0 : index
    %c0_58 = arith.constant 0 : index
    %c0_59 = arith.constant 0 : index
    %153 = vector.load %arg12[%c0_57, %c0_58, %c0_59] : memref<1x1x32xf32, #tpu.memory_space<vmem>>, vector<1x1x32xf32>
    %154 = vector.shape_cast %153 : vector<1x1x32xf32> to vector<1x32xf32>
    %c0_60 = arith.constant 0 : index
    %c0_61 = arith.constant 0 : index
    %c0_62 = arith.constant 0 : index
    %155 = vector.load %arg13[%c0_60, %c0_61, %c0_62] : memref<1x1x32xf32, #tpu.memory_space<vmem>>, vector<1x1x32xf32>
    %156 = vector.shape_cast %155 : vector<1x1x32xf32> to vector<1x32xf32>
    %cst_63 = arith.constant dense<0.000000e+00> : vector<16xf32>
    %157 = vector.multi_reduction <add>, %152, %cst_63 [1] : vector<16x32xf32> to vector<16xf32>
    %158 = vector.shape_cast %157 : vector<16xf32> to vector<16x1xf32>
    %cst_64 = arith.constant 3.200000e+01 : f32
    %159 = vector.broadcast %cst_64 : f32 to vector<16x1xf32>
    %160 = arith.divf %158, %159 : vector<16x1xf32>
    %161 = vector.broadcast %160 : vector<16x1xf32> to vector<16x32xf32>
    %162 = arith.subf %152, %161 : vector<16x32xf32>
    %163 = arith.mulf %162, %162 : vector<16x32xf32>
    %cst_65 = arith.constant dense<0.000000e+00> : vector<16xf32>
    %164 = vector.multi_reduction <add>, %163, %cst_65 [1] : vector<16x32xf32> to vector<16xf32>
    %165 = vector.shape_cast %164 : vector<16xf32> to vector<16x1xf32>
    %cst_66 = arith.constant 3.200000e+01 : f32
    %166 = vector.broadcast %cst_66 : f32 to vector<16x1xf32>
    %167 = arith.divf %165, %166 : vector<16x1xf32>
    %168 = vector.broadcast %160 : vector<16x1xf32> to vector<16x32xf32>
    %169 = arith.subf %152, %168 : vector<16x32xf32>
    %cst_67 = arith.constant 9.99999974E-6 : f32
    %170 = vector.broadcast %cst_67 : f32 to vector<16x1xf32>
    %171 = arith.addf %167, %170 : vector<16x1xf32>
    %172 = math.rsqrt %171 : vector<16x1xf32>
    %173 = vector.broadcast %172 : vector<16x1xf32> to vector<16x32xf32>
    %174 = arith.mulf %169, %173 : vector<16x32xf32>
    %175 = vector.broadcast %154 : vector<1x32xf32> to vector<16x32xf32>
    %176 = arith.mulf %174, %175 : vector<16x32xf32>
    %177 = vector.broadcast %156 : vector<1x32xf32> to vector<16x32xf32>
    %178 = arith.addf %176, %177 : vector<16x32xf32>
    %c0_68 = arith.constant 0 : index
    %c0_69 = arith.constant 0 : index
    %c0_70 = arith.constant 0 : index
    %179 = vector.load %arg14[%c0_68, %c0_69, %c0_70] : memref<1x32x128xf32, #tpu.memory_space<vmem>>, vector<1x32x128xf32>
    %180 = vector.shape_cast %179 : vector<1x32x128xf32> to vector<32x128xf32>
    %cst_71 = arith.constant dense<0.000000e+00> : vector<16x128xf32>
    %181 = tpu.matmul %178, %180, %cst_71 {dimension_numbers = #tpu.dot_dimension_numbers<[1], [0], [0], [1], [0, 0, 1, 1], [], []>} : vector<16x32xf32>, vector<32x128xf32>, vector<16x128xf32> -> vector<16x128xf32>
    %c0_72 = arith.constant 0 : index
    %c0_73 = arith.constant 0 : index
    %c0_74 = arith.constant 0 : index
    %182 = vector.load %arg15[%c0_72, %c0_73, %c0_74] : memref<1x1x128xf32, #tpu.memory_space<vmem>>, vector<1x1x128xf32>
    %183 = vector.shape_cast %182 : vector<1x1x128xf32> to vector<1x128xf32>
    %184 = vector.broadcast %183 : vector<1x128xf32> to vector<16x128xf32>
    %185 = arith.addf %181, %184 : vector<16x128xf32>
    %cst_75 = arith.constant 1.702000e+00 : f32
    %186 = vector.broadcast %cst_75 : f32 to vector<16x128xf32>
    %187 = arith.mulf %186, %185 : vector<16x128xf32>
    %188 = arith.negf %187 : vector<16x128xf32>
    %189 = math.exp %188 : vector<16x128xf32>
    %cst_76 = arith.constant 1.000000e+00 : f32
    %190 = vector.broadcast %cst_76 : f32 to vector<16x128xf32>
    %191 = arith.addf %190, %189 : vector<16x128xf32>
    %192 = arith.divf %190, %191 : vector<16x128xf32>
    %193 = arith.mulf %185, %192 : vector<16x128xf32>
    %c0_77 = arith.constant 0 : index
    %c0_78 = arith.constant 0 : index
    %c0_79 = arith.constant 0 : index
    %194 = vector.load %arg16[%c0_77, %c0_78, %c0_79] : memref<1x128x32xf32, #tpu.memory_space<vmem>>, vector<1x128x32xf32>
    %195 = vector.shape_cast %194 : vector<1x128x32xf32> to vector<128x32xf32>
    %cst_80 = arith.constant dense<0.000000e+00> : vector<16x32xf32>
    %196 = tpu.matmul %193, %195, %cst_80 {dimension_numbers = #tpu.dot_dimension_numbers<[1], [0], [0], [1], [0, 0, 1, 1], [], []>} : vector<16x128xf32>, vector<128x32xf32>, vector<16x32xf32> -> vector<16x32xf32>
    %c0_81 = arith.constant 0 : index
    %c0_82 = arith.constant 0 : index
    %c0_83 = arith.constant 0 : index
    %197 = vector.load %arg17[%c0_81, %c0_82, %c0_83] : memref<1x1x32xf32, #tpu.memory_space<vmem>>, vector<1x1x32xf32>
    %198 = vector.shape_cast %197 : vector<1x1x32xf32> to vector<1x32xf32>
    %199 = vector.broadcast %198 : vector<1x32xf32> to vector<16x32xf32>
    %200 = arith.addf %196, %199 : vector<16x32xf32>
    %201 = arith.addf %152, %200 : vector<16x32xf32>
    %202 = vector.shape_cast %201 : vector<16x32xf32> to vector<2x8x32xf32>
    %c0_84 = arith.constant 0 : index
    %c0_85 = arith.constant 0 : index
    %c0_86 = arith.constant 0 : index
    %203 = vector.load %arg22[%c0_84, %c0_85, %c0_86] : memref<2x8x32xf32, #tpu.memory_space<vmem>>, vector<2x8x32xf32>
    tpu.vector_store %arg22[%c0_84, %c0_85, %c0_86], %202 {strides = array<i32>} : memref<2x8x32xf32, #tpu.memory_space<vmem>>, vector<2x8x32xf32>,
    %c2_i32_87 = arith.constant 2 : i32
    %204 = arith.cmpi eq, %arg1, %c2_i32_87 : i32
    %205 = arith.extui %204 : i1 to i32
    %c0_i32_88 = arith.constant 0 : i32
    %206 = arith.cmpi ne, %205, %c0_i32_88 : i32
    scf.if %206 {
      %c2_i32_89 = arith.constant 2 : i32
      %207 = arith.muli %arg0, %c2_i32_89 : i32
      %c0_i32_90 = arith.constant 0 : i32
      %208 = arith.addi %207, %c0_i32_90 : i32
      %209 = arith.index_cast %208 : i32 to index
      %210 = memref.load %arg2[%209] : memref<2xi32, #tpu.memory_space<smem>>
      %c0_91 = arith.constant 0 : index
      %211 = arith.index_cast %210 : i32 to index
      %c0_92 = arith.constant 0 : index
      %212 = vector.load %arg22[%c0_91, %211, %c0_92] : memref<2x8x32xf32, #tpu.memory_space<vmem>>, vector<1x1x32xf32>
      %213 = vector.shape_cast %212 : vector<1x1x32xf32> to vector<1x32xf32>
      %c2_i32_93 = arith.constant 2 : i32
      %214 = arith.muli %arg0, %c2_i32_93 : i32
      %c1_i32_94 = arith.constant 1 : i32
      %215 = arith.addi %214, %c1_i32_94 : i32
      %216 = arith.index_cast %215 : i32 to index
      %217 = memref.load %arg2[%216] : memref<2xi32, #tpu.memory_space<smem>>
      %c1 = arith.constant 1 : index
      %218 = arith.index_cast %217 : i32 to index
      %c0_95 = arith.constant 0 : index
      %219 = vector.load %arg22[%c1, %218, %c0_95] : memref<2x8x32xf32, #tpu.memory_space<vmem>>, vector<1x1x32xf32>
      %220 = vector.shape_cast %219 : vector<1x1x32xf32> to vector<1x32xf32>
      %221 = tpu.concatenate %213, %220 in 0 : vector<1x32xf32>, vector<1x32xf32> -> vector<2x32xf32>
      %c0_96 = arith.constant 0 : index
      %c0_97 = arith.constant 0 : index
      %222 = vector.load %arg18[%c0_96, %c0_97] : memref<1x32xf32, #tpu.memory_space<vmem>>, vector<1x32xf32>
      %c0_98 = arith.constant 0 : index
      %c0_99 = arith.constant 0 : index
      %223 = vector.load %arg19[%c0_98, %c0_99] : memref<1x32xf32, #tpu.memory_space<vmem>>, vector<1x32xf32>
      %cst_100 = arith.constant dense<0.000000e+00> : vector<2xf32>
      %224 = vector.multi_reduction <add>, %221, %cst_100 [1] : vector<2x32xf32> to vector<2xf32>
      %225 = vector.shape_cast %224 : vector<2xf32> to vector<2x1xf32>
      %cst_101 = arith.constant 3.200000e+01 : f32
      %226 = vector.broadcast %cst_101 : f32 to vector<2x1xf32>
      %227 = arith.divf %225, %226 : vector<2x1xf32>
      %228 = vector.broadcast %227 : vector<2x1xf32> to vector<2x32xf32>
      %229 = arith.subf %221, %228 : vector<2x32xf32>
      %230 = arith.mulf %229, %229 : vector<2x32xf32>
      %cst_102 = arith.constant dense<0.000000e+00> : vector<2xf32>
      %231 = vector.multi_reduction <add>, %230, %cst_102 [1] : vector<2x32xf32> to vector<2xf32>
      %232 = vector.shape_cast %231 : vector<2xf32> to vector<2x1xf32>
      %cst_103 = arith.constant 3.200000e+01 : f32
      %233 = vector.broadcast %cst_103 : f32 to vector<2x1xf32>
      %234 = arith.divf %232, %233 : vector<2x1xf32>
      %235 = vector.broadcast %227 : vector<2x1xf32> to vector<2x32xf32>
      %236 = arith.subf %221, %235 : vector<2x32xf32>
      %cst_104 = arith.constant 9.99999974E-6 : f32
      %237 = vector.broadcast %cst_104 : f32 to vector<2x1xf32>
      %238 = arith.addf %234, %237 : vector<2x1xf32>
      %239 = math.rsqrt %238 : vector<2x1xf32>
      %240 = vector.broadcast %239 : vector<2x1xf32> to vector<2x32xf32>
      %241 = arith.mulf %236, %240 : vector<2x32xf32>
      %242 = vector.broadcast %222 : vector<1x32xf32> to vector<2x32xf32>
      %243 = arith.mulf %241, %242 : vector<2x32xf32>
      %244 = vector.broadcast %223 : vector<1x32xf32> to vector<2x32xf32>
      %245 = arith.addf %243, %244 : vector<2x32xf32>
      %c0_105 = arith.constant 0 : index
      %c0_106 = arith.constant 0 : index
      %246 = vector.load %arg20[%c0_105, %c0_106] : memref<32x16xf32, #tpu.memory_space<vmem>>, vector<32x16xf32>
      %cst_107 = arith.constant dense<0.000000e+00> : vector<2x16xf32>
      %247 = tpu.matmul %245, %246, %cst_107 {dimension_numbers = #tpu.dot_dimension_numbers<[1], [0], [0], [1], [0, 0, 1, 1], [], []>} : vector<2x32xf32>, vector<32x16xf32>, vector<2x16xf32> -> vector<2x16xf32>
      %c0_108 = arith.constant 0 : index
      %c0_109 = arith.constant 0 : index
      %c0_110 = arith.constant 0 : index
      %248 = vector.load %arg21[%c0_108, %c0_109, %c0_110] : memref<1x2x16xf32, #tpu.memory_space<vmem>>, vector<1x2x16xf32>
      %249 = vector.shape_cast %248 : vector<1x2x16xf32> to vector<2x16xf32>
      %250 = vector.shape_cast %247 : vector<2x16xf32> to vector<1x2x16xf32>
      tpu.vector_store %arg21[%c0_108, %c0_109, %c0_110], %250 {strides = array<i32>} : memref<1x2x16xf32, #tpu.memory_space<vmem>>, vector<1x2x16xf32>,
    } else {
    }
    return
  }
  func.func @transform_0(%arg0: i32, %arg1: i32, %arg2: memref<2xi32, #tpu.memory_space<smem>>) -> (i32, i32, i32) {
    %c0_i32 = arith.constant 0 : i32
    %c0_i32_0 = arith.constant 0 : i32
    %c0_i32_1 = arith.constant 0 : i32
    return %arg0, %c0_i32, %c0_i32_0 : i32, i32, i32
  }
  func.func @transform_1(%arg0: i32, %arg1: i32, %arg2: memref<2xi32, #tpu.memory_space<smem>>) -> (i32, i32, i32) {
    %c0_i32 = arith.constant 0 : i32
    %c0_i32_0 = arith.constant 0 : i32
    %c0_i32_1 = arith.constant 0 : i32
    %c0_i32_2 = arith.constant 0 : i32
    return %c0_i32, %c0_i32_0, %c0_i32_1 : i32, i32, i32
  }
  func.func @transform_2(%arg0: i32, %arg1: i32, %arg2: memref<2xi32, #tpu.memory_space<smem>>) -> (i32, i32, i32) {
    %c0_i32 = arith.constant 0 : i32
    %c0_i32_0 = arith.constant 0 : i32
    %c0_i32_1 = arith.constant 0 : i32
    return %arg1, %c0_i32, %c0_i32_0 : i32, i32, i32
  }
  func.func @transform_3(%arg0: i32, %arg1: i32, %arg2: memref<2xi32, #tpu.memory_space<smem>>) -> (i32, i32, i32) {
    %c0_i32 = arith.constant 0 : i32
    %c0_i32_0 = arith.constant 0 : i32
    %c0_i32_1 = arith.constant 0 : i32
    return %arg1, %c0_i32, %c0_i32_0 : i32, i32, i32
  }
  func.func @transform_4(%arg0: i32, %arg1: i32, %arg2: memref<2xi32, #tpu.memory_space<smem>>) -> (i32, i32, i32) {
    %c0_i32 = arith.constant 0 : i32
    %c0_i32_0 = arith.constant 0 : i32
    %c0_i32_1 = arith.constant 0 : i32
    return %arg1, %c0_i32, %c0_i32_0 : i32, i32, i32
  }
  func.func @transform_5(%arg0: i32, %arg1: i32, %arg2: memref<2xi32, #tpu.memory_space<smem>>) -> (i32, i32, i32) {
    %c0_i32 = arith.constant 0 : i32
    %c0_i32_0 = arith.constant 0 : i32
    %c0_i32_1 = arith.constant 0 : i32
    return %arg1, %c0_i32, %c0_i32_0 : i32, i32, i32
  }
  func.func @transform_6(%arg0: i32, %arg1: i32, %arg2: memref<2xi32, #tpu.memory_space<smem>>) -> (i32, i32, i32) {
    %c0_i32 = arith.constant 0 : i32
    %c0_i32_0 = arith.constant 0 : i32
    %c0_i32_1 = arith.constant 0 : i32
    return %arg1, %c0_i32, %c0_i32_0 : i32, i32, i32
  }
  func.func @transform_7(%arg0: i32, %arg1: i32, %arg2: memref<2xi32, #tpu.memory_space<smem>>) -> (i32, i32, i32) {
    %c0_i32 = arith.constant 0 : i32
    %c0_i32_0 = arith.constant 0 : i32
    %c0_i32_1 = arith.constant 0 : i32
    return %arg1, %c0_i32, %c0_i32_0 : i32, i32, i32
  }
  func.func @transform_8(%arg0: i32, %arg1: i32, %arg2: memref<2xi32, #tpu.memory_space<smem>>) -> (i32, i32, i32) {
    %c0_i32 = arith.constant 0 : i32
    %c0_i32_0 = arith.constant 0 : i32
    %c0_i32_1 = arith.constant 0 : i32
    return %arg1, %c0_i32, %c0_i32_0 : i32, i32, i32
  }
  func.func @transform_9(%arg0: i32, %arg1: i32, %arg2: memref<2xi32, #tpu.memory_space<smem>>) -> (i32, i32, i32) {
    %c0_i32 = arith.constant 0 : i32
    %c0_i32_0 = arith.constant 0 : i32
    %c0_i32_1 = arith.constant 0 : i32
    return %arg1, %c0_i32, %c0_i32_0 : i32, i32, i32
  }
  func.func @transform_10(%arg0: i32, %arg1: i32, %arg2: memref<2xi32, #tpu.memory_space<smem>>) -> (i32, i32, i32) {
    %c0_i32 = arith.constant 0 : i32
    %c0_i32_0 = arith.constant 0 : i32
    %c0_i32_1 = arith.constant 0 : i32
    return %arg1, %c0_i32, %c0_i32_0 : i32, i32, i32
  }
  func.func @transform_11(%arg0: i32, %arg1: i32, %arg2: memref<2xi32, #tpu.memory_space<smem>>) -> (i32, i32, i32) {
    %c0_i32 = arith.constant 0 : i32
    %c0_i32_0 = arith.constant 0 : i32
    %c0_i32_1 = arith.constant 0 : i32
    return %arg1, %c0_i32, %c0_i32_0 : i32, i32, i32
  }
  func.func @transform_12(%arg0: i32, %arg1: i32, %arg2: memref<2xi32, #tpu.memory_space<smem>>) -> (i32, i32, i32) {
    %c0_i32 = arith.constant 0 : i32
    %c0_i32_0 = arith.constant 0 : i32
    %c0_i32_1 = arith.constant 0 : i32
    return %arg1, %c0_i32, %c0_i32_0 : i32, i32, i32
  }
  func.func @transform_13(%arg0: i32, %arg1: i32, %arg2: memref<2xi32, #tpu.memory_space<smem>>) -> (i32, i32, i32) {
    %c0_i32 = arith.constant 0 : i32
    %c0_i32_0 = arith.constant 0 : i32
    %c0_i32_1 = arith.constant 0 : i32
    return %arg1, %c0_i32, %c0_i32_0 : i32, i32, i32
  }
  func.func @transform_14(%arg0: i32, %arg1: i32, %arg2: memref<2xi32, #tpu.memory_space<smem>>) -> (i32, i32, i32) {
    %c0_i32 = arith.constant 0 : i32
    %c0_i32_0 = arith.constant 0 : i32
    %c0_i32_1 = arith.constant 0 : i32
    return %arg1, %c0_i32, %c0_i32_0 : i32, i32, i32
  }
  func.func @transform_15(%arg0: i32, %arg1: i32, %arg2: memref<2xi32, #tpu.memory_space<smem>>) -> (i32, i32) {
    %c0_i32 = arith.constant 0 : i32
    %c0_i32_0 = arith.constant 0 : i32
    %c0_i32_1 = arith.constant 0 : i32
    return %c0_i32, %c0_i32_0 : i32, i32
  }
  func.func @transform_16(%arg0: i32, %arg1: i32, %arg2: memref<2xi32, #tpu.memory_space<smem>>) -> (i32, i32) {
    %c0_i32 = arith.constant 0 : i32
    %c0_i32_0 = arith.constant 0 : i32
    %c0_i32_1 = arith.constant 0 : i32
    return %c0_i32, %c0_i32_0 : i32, i32
  }
  func.func @transform_17(%arg0: i32, %arg1: i32, %arg2: memref<2xi32, #tpu.memory_space<smem>>) -> (i32, i32) {
    %c0_i32 = arith.constant 0 : i32
    %c0_i32_0 = arith.constant 0 : i32
    %c0_i32_1 = arith.constant 0 : i32
    return %c0_i32, %c0_i32_0 : i32, i32
  }
  func.func @transform_18(%arg0: i32, %arg1: i32, %arg2: memref<2xi32, #tpu.memory_space<smem>>) -> (i32, i32, i32) {
    %c0_i32 = arith.constant 0 : i32
    %c0_i32_0 = arith.constant 0 : i32
    %c0_i32_1 = arith.constant 0 : i32
    return %arg0, %c0_i32, %c0_i32_0 : i32, i32, i32
  }
}

</mosaic_0001>

<bundles_post_ra>
// kernel: tpu_custom_call.1
= control target key start
LH: loop header
LB: loop body
LE: loop exit
PB: predicated region body
PF: predicated region fallthrough
CT: control target
= control target key end

     0   :  { %s5736_s0 = inlined_call_operand.hbm [shape: s32[2], index: 0, kind: input, shape index: {}]   ;;  %s5737_s1 = inlined_call_operand.hbm [shape: f32[2,8,32], index: 1, kind: input, shape index: {}]   ;;  %s5738_s2 = inlined_call_operand.hbm [shape: f32[1,8,32], index: 2, kind: input, shape index: {}]   ;;  %s5739_s3 = inlined_call_operand.hbm [shape: f32[3,2,32], index: 3, kind: input, shape index: {}]   ;;  %s5740_s4 = inlined_call_operand.hbm [shape: f32[3,1,32], index: 4, kind: input, shape index: {}]   ;;  %s5741_s5 = inlined_call_operand.hbm [shape: f32[3,1,32], index: 5, kind: input, shape index: {}]   ;;  %s5742_s6 = inlined_call_operand.hbm [shape: f32[3,32,96], index: 6, kind: input, shape index: {}]   ;;  %s5743_s7 = inlined_call_operand.hbm [shape: f32[3,1,96], index: 7, kind: input, shape index: {}]   ;;  %s5744_s8 = inlined_call_operand.hbm [shape: f32[3,32,32], index: 8, kind: input, shape index: {}]   ;;  %s5745_s9 = inlined_call_operand.hbm [shape: f32[3,1,32], index: 9, kind: input, shape index: {}]   ;;  %s5746_s10 = inlined_call_operand.hbm [shape: f32[3,1,32], index: 10, kind: input, shape index: {}]   ;;  %s5747_s11 = inlined_call_operand.hbm [shape: f32[3,1,32], index: 11, kind: input, shape index: {}]   ;;  %s5748_s12 = inlined_call_operand.hbm [shape: f32[3,32,128], index: 12, kind: input, shape index: {}]   ;;  %s5749_s13 = inlined_call_operand.hbm [shape: f32[3,1,128], index: 13, kind: input, shape index: {}]   ;;  %s5750_s14 = inlined_call_operand.hbm [shape: f32[3,128,32], index: 14, kind: input, shape index: {}]   ;;  %s5751_s15 = inlined_call_operand.hbm [shape: f32[3,1,32], index: 15, kind: input, shape index: {}]   ;;  %s5752_s16 = inlined_call_operand.hbm [shape: f32[1,32], index: 16, kind: input, shape index: {}]   ;;  %s5753_s17 = inlined_call_operand.hbm [shape: f32[1,32], index: 17, kind: input, shape index: {}]   ;;  %s5754_s18 = inlined_call_operand.hbm [shape: f32[32,16], index: 18, kind: input, shape index: {}]   ;;  %s5755_s19 = inlined_call_operand.hbm [shape: f32[1,2,16], index: 19, kind: output, shape index: {}]  }
   0x1   :  { %5800 = sst [smem:[#allocation45_spill]] %s5736_s0 }
   0x2   :  { %5801 = sst [smem:[#allocation46_spill]] %s5737_s1  ;;  %s5817_s20 = sld [smem:[#allocation45_spill]] }
   0x3   :  { %5802 = sst [smem:[#allocation47_spill]] %s5738_s2 }
   0x4   :  { %5803 = sst [smem:[#allocation48_spill]] %s5739_s3 }
   0x5   :  { %5804 = sst [smem:[#allocation49_spill]] %s5740_s4 }
   0x6   :  { %5805 = sst [smem:[#allocation50_spill]] %s5741_s5 }
   0x7   :  { %5806 = sst [smem:[#allocation51_spill]] %s5742_s6 }
   0x8   :  { %5807 = sst [smem:[#allocation52_spill]] %s5743_s7 }
   0x9   :  { %5808 = sst [smem:[#allocation53_spill]] %s5744_s8 }
   0xa   :  { %5809 = sst [smem:[#allocation54_spill]] %s5745_s9 }
   0xb   :  { %5810 = sst [smem:[#allocation55_spill]] %s5749_s13  ;;  %s4064_s13 = scalar_lea.hbm %s5817_s20, 16 }
   0xc   :  { %5811 = sst [smem:[#allocation56_spill]] %s5750_s14  ;;  %p4065_p0 = scmp.ne.s32.totalorder %s5817_s20, %s4064_s13 }
   0xd   :  { %5812 = sst [smem:[#allocation57_spill]] %s5751_s15  ;;  %p4068_p1 = scmp.lt.u32.totalorder %s4064_s13, %s5817_s20 }
   0xe   :  { %5813 = sst [smem:[#allocation58_spill]] %s5752_s16 }
   0xf   :  { %5814 = sst [smem:[#allocation59_spill]] %s5753_s17  ;;  %p4070_p2 = pnand %p4068_p1, %p4065_p0 }
  0x10   :  { %5815 = sst [smem:[#allocation60_spill]] %s5754_s18 }
  0x11   :  { %5816 = sst [smem:[#allocation61_spill]] %s5755_s19 }
  0x12   :  { %4073 = shalt.err (!%p4070_p2)  }
  0x13   :  { %s4704_s23 = smov [#allocation6]  }
  0x14   :  { %25 = dma.hbm_to_smem %s5817_s20, 16, %s4704_s23, [#allocation5] }
  0x15   :  { %4654 = dma.done.wait [#allocation5], 16 }
  0x16   :  { %4655 = vsyncadd [#allocation5], 4294967280 }
  0x17   :  { %27 = sfence }
  0x18   :  { %28 = vsyncpa [#allocation8], 0 }
  0x19   :  { %29 = vsyncpa [#allocation11], 0 }
  0x1a   :  { %30 = vsyncpa [#allocation27], 0 }
  0x1b   :  { %31 = vsyncpa [#allocation9], 0  ;;  %s4858_s3 = smov 0   ;;  %s4860_s26 = smov 0  }
  0x1c   :  { %s4862_s27 = smov 0   ;;  %s4864_s13 = smov 0  }
  0x1d   :  { %s4866_s28 = smov 0   ;;  %s4868_s29 = smov 0  }
  0x1e LB: > { %5818 = sst [smem:[#allocation37_spill]] %s4686_s26  ;;  %s4887_s0 = sadd.s32 4294967295, %s4702_s29   ;;  %s4702_s29 = sphi %s4868_s29, %s37_s29   ;;  %s4698_s28 = sphi %s4866_s28, %s5891_s28   ;;  %s4694_s13 = sphi %s4864_s13, %s5890_s13   ;;  %s4690_s27 = sphi %s4862_s27, %s5889_s27   ;;  %s4686_s26 = sphi %s4860_s26, %s5888_s26   ;;  %s4682_s3 = sphi %s4858_s3, %s5885_s3  }
  0x1f   : > { %5819 = sst [smem:[#allocation38_spill]] %s4694_s13  ;;  %p110_p3 = scmp.ne.s32.totalorder %s4690_s27, %s4686_s26 }
  0x20   : > { %5820 = sst [smem:[#allocation39_spill]] %s4887_s0  ;;  %p111_p4 = scmp.eq.s32.totalorder %s4702_s29, 0 }
  0x21   : > { %p116_p5 = scmp.ne.s32.totalorder %s4686_s26, %s4682_s3  ;;  %p5770_p6 = scmp.eq.s32.totalorder %s4887_s0, 0 }
  0x22   : > { %p3429_p7 = scmp.ge.s32.totalorder %s4702_s29, 1  ;;  %p112_p8 = por %p111_p4, %p110_p3 }
  0x23   : > { %p528_p9 = scmp.lt.s32.totalorder %s4702_s29, 4  ;;  %p4898_p10 = por %p5770_p6, %p116_p5 }
  0x24   : > { %s4705_s21 = smov [#allocation7]   ;;  %p3929_p0 = scmp.lt.s32.totalorder %s4702_s29, 3 }
  0x25   : > { %s5821_s30 = scalar_select %p4898_p10, 1, 0 }
  0x26   : > { %p4902_p11 = pnand %p3429_p7, %p528_p9  ;;  %s543_s1 = sshll.u32 %s4705_s21, 4  ;;  %s544_s1 = int_to_ptr.vmem [resolvable:$true] %s543_s1 }
  0x27   : > { %5822 = sst [smem:[#allocation40_spill]] %s5821_s30  ;;  %s4916_s2 = sand.u32 1, %s4690_s27  }
  0x28   : > { %s5823_s20 = scalar_select %p4902_p11, 1, 0 }
  0x29   : > { %p3868_p12 = pneg %p4902_p11  ;;  %p4918_p1 = pnand %p3929_p0, %p112_p8 }
  0x2a   : > { %5824 = sst [smem:[#allocation41_spill]] %s5823_s20  ;;  %s5828_s3 = sld [smem:[#allocation46_spill]] }
  0x2b   : > { %p4910_p13 = pnand %p3868_p12, %p5770_p6 }
  0x2c   : > { %s5827_s23 = scalar_select %p4918_p1, 1, 0 }
  0x2d   : > { %s5825_s22 = scalar_select %p4910_p13, 1, 0 }
  0x2e   : > { %p4930_p3 = pneg %p4910_p13 }
  0x2f   : > { %5826 = sst [smem:[#allocation42_spill]] %s5825_s22 }
  0x30   : > { %s5829_s19 = smov %s5828_s3  ;;  %s4074_s21 = scalar_lea.hbm %s5828_s3, 256 }
  0x31   : > { %p4075_p2 = scmp.ne.s32.totalorder %s5829_s19, %s4074_s21  ;;  %p4081_p7 = scmp.lt.u32.totalorder %s4074_s21, %s5829_s19 }
  0x32   : > { %s5830_s26 = scalar_select %p4930_p3, 1, 0 }
  0x33   : > { %p4077_p4 = pnand %p4930_p3, %p4075_p2 }
  0x35   : > { %p4078_p5 = pneg %p4077_p4 }
  0x37   : > { %p4083_p8 = pnand %p4081_p7, %p4078_p5 }
  0x39   : > { %4086 = shalt.err (!%p4083_p8)
}
  0x3a   : > { %s4087_s24 = scalar_lea.vmem %s544_s1, 256  ;;  %p4095_p6 = scmp.lt.s32.totalorder %s544_s1, %s544_s1 }
  0x3b   : > { %p4088_p9 = scmp.ne.s32.totalorder %s544_s1, %s4087_s24  ;;  %p4096_p10 = scmp.lt.s32.totalorder %s4087_s24, %s4087_s24 }
  0x3d   : > { %p4090_p12 = pnand %p4088_p9, %p4930_p3  ;;  %p4097_p11 = por %p4096_p10, %p4095_p6 }
  0x3f   : > { %p4091_p0 = pneg %p4090_p12 }
  0x41   : > { %p4098_p1 = pnand %p4097_p11, %p4091_p0 }
  0x43   : > { %4101 = shalt.err (!%p4098_p1)
}
  0x44   : > { %s5781_s13 = smov 128   ;;  %s5783_s0 = smov 8  }
  0x45   : > { %3871 = dma.hbm_to_vmem [thread:$0]  (!%p4910_p13), %s5829_s19, 256, %s544_s1, [#allocation8], %s5781_s13, %s5781_s13, %s5783_s0  }
  0x46   : > { %s46_s25 = sadd.s32 1, %s4698_s28  ;;  %s103_s3 = sadd.s32 1, %s4690_s27 }
  0x47   : > { %p47_p6 = scmp.ge.s32.totalorder %s46_s25, 3  ;;  %s603_s21 = sand.u32 1, %s4702_s29  }
  0x48   : > { %s3436_s24 = sshll.u32 %s4916_s2, 1  ;;  %s3437_s15 = sshll.u32 %s4698_s28, 5 }
  0x49   : > { %s5893_s25 = smov (%p47_p6, %s46_s25), 0  ;;  %s5832_s17 = sld [smem:[#allocation48_spill]] }
  0x4a   : > { %5831 = sst [smem:[#allocation43_spill]] %s5893_s25  ;;  %s100_s18 = ssub.s32 %s4698_s28, %s5893_s25 }
  0x4b   : > { %p101_p10 = scmp.eq.s32.totalorder %s100_s18, 0  ;;  %s607_s1 = scalar_lea.vmem [#allocation12], %s3436_s24 }
  0x4c   : > { %s614_s30 = sshll.u32 %s607_s1, 4  ;;  %s4968_s13 = scalar_lea.sflag [#allocation8], %s603_s21  ;;  %s4963_s30 = int_to_ptr.vmem [resolvable:$true] %s614_s30 }
  0x4d   : > { %s4966_s20 = scalar_select %p101_p10, %s4690_s27, %s103_s3  }
  0x4e   : > { %p5834_p1 = scmp.ne.s32.totalorder %s5827_s23, 0 }
  0x4f   : > { %s4961_s22 = scalar_lea.hbm %s5832_s17, %s3437_s15  ;;  %5833 = sst [smem:[#allocation44_spill]] %s4966_s20 }
  0x50   : > { %s4102_s0 = scalar_lea.hbm %s4961_s22, 32  ;;  %p4974_p2 = pneg %p5834_p1 }
  0x51   : > { %p4103_p11 = scmp.ne.s32.totalorder %s4961_s22, %s4102_s0  ;;  %s4107_s18 = scalar_lea.hbm %s5832_s17, 96 }
  0x52   : > { %s5835_s14 = scalar_select %p4974_p2, 1, 0 }
  0x53   : > { %p4105_p4 = pnand %p4974_p2, %p4103_p11  ;;  %p4108_p7 = scmp.lt.u32.totalorder %s4961_s22, %s5832_s17 }
  0x54   : > { %p4109_p8 = scmp.lt.u32.totalorder %s4107_s18, %s4102_s0  ;;  %p4111_p12 = scmp.lt.u32.totalorder %s4102_s0, %s4961_s22 }
  0x55   : > { %p4106_p5 = pneg %p4105_p4 }
  0x56   : > { %p4110_p9 = por %p4109_p8, %p4108_p7 }
  0x58   : > { %p4112_p0 = por %p4111_p12, %p4110_p9 }
  0x5a   : > { %p4113_p6 = pnand %p4112_p0, %p4106_p5 }
  0x5c   : > { %4116 = shalt.err (!%p4113_p6)
}
  0x5d   : > { %s4117_s21 = scalar_lea.vmem %s4963_s30, 32  ;;  %s4708_s1 = smov [#allocation12]  }
  0x5e   : > { %p4118_p10 = scmp.ne.s32.totalorder %s4963_s30, %s4117_s21  ;;  %s4122_s15 = sshll.u32 %s4708_s1, 4  ;;  %s4123_s15 = int_to_ptr.vmem [resolvable:$false] %s4122_s15 }
  0x5f   : > { %s4124_s16 = scalar_lea.vmem %s4123_s15, 64  ;;  %p4125_p13 = scmp.lt.s32.totalorder %s4963_s30, %s4123_s15 }
  0x60   : > { %p4120_p11 = pnand %p4118_p10, %p4974_p2  ;;  %p4126_p3 = scmp.lt.s32.totalorder %s4124_s16, %s4117_s21 }
  0x62   : > { %p4121_p4 = pneg %p4120_p11  ;;  %p4127_p7 = por %p4126_p3, %p4125_p13 }
  0x64   : > { %p4128_p8 = pnand %p4127_p7, %p4121_p4 }
  0x66   : > { %4131 = shalt.err (!%p4128_p8)
}
  0x67   : > { %3887 = dma.hbm_to_vmem [thread:$0]  (!%p5834_p1), %s4961_s22, 32, %s4963_s30, %s4968_s13  }
  0x68   : > { %s4999_s0 = sshll.u32 %s4698_s28, 4  ;;  %s624_s18 = scalar_lea.vmem [#allocation13], %s4916_s2 }
  0x69   : > { %s631_s24 = sshll.u32 %s624_s18, 4  ;;  %s5836_s4 = sld [smem:[#allocation49_spill]]  ;;  %s632_s24 = int_to_ptr.vmem [resolvable:$true] %s631_s24 }
  0x6f   : > { %s629_s21 = scalar_lea.hbm %s5836_s4, %s4999_s0  ;;  %s4137_s19 = scalar_lea.hbm %s5836_s4, 48 }
  0x70   : > { %s4132_s15 = scalar_lea.hbm %s629_s21, 16  ;;  %p4138_p9 = scmp.lt.u32.totalorder %s629_s21, %s5836_s4 }
  0x71   : > { %p4133_p13 = scmp.ne.s32.totalorder %s629_s21, %s4132_s15  ;;  %p4139_p12 = scmp.lt.u32.totalorder %s4137_s19, %s4132_s15 }
  0x72   : > { %p4141_p6 = scmp.lt.u32.totalorder %s4132_s15, %s629_s21 }
  0x73   : > { %p4135_p3 = pnand %p4133_p13, %p4974_p2  ;;  %p4140_p0 = por %p4139_p12, %p4138_p9 }
  0x75   : > { %p4136_p5 = pneg %p4135_p3  ;;  %p4142_p10 = por %p4141_p6, %p4140_p0 }
  0x77   : > { %p4143_p11 = pnand %p4142_p10, %p4136_p5 }
  0x79   : > { %4146 = shalt.err (!%p4143_p11)
}
  0x7a   : > { %s4147_s18 = scalar_lea.vmem %s632_s24, 16  ;;  %s4709_s3 = smov [#allocation13]  }
  0x7b   : > { %p4148_p4 = scmp.ne.s32.totalorder %s632_s24, %s4147_s18  ;;  %s4152_s1 = sshll.u32 %s4709_s3, 4  ;;  %s4153_s1 = int_to_ptr.vmem [resolvable:$false] %s4152_s1 }
  0x7c   : > { %s4154_s17 = scalar_lea.vmem %s4153_s1, 32  ;;  %p4155_p13 = scmp.lt.s32.totalorder %s632_s24, %s4153_s1 }
  0x7d   : > { %p4150_p7 = pnand %p4148_p4, %p4974_p2  ;;  %p4156_p3 = scmp.lt.s32.totalorder %s4154_s17, %s4147_s18 }
  0x7f   : > { %p4151_p8 = pneg %p4150_p7  ;;  %p4157_p1 = por %p4156_p3, %p4155_p13 }
  0x81   : > { %p4158_p9 = pnand %p4157_p1, %p4151_p8 }
  0x83   : > { %4161 = shalt.err (!%p4158_p9)
}
  0x84   : > { %p5837_p12 = scmp.ne.s32.totalorder %s5827_s23, 0  ;;  %s5838_s5 = sld [smem:[#allocation50_spill]] }
  0x85   : > { %s641_s22 = scalar_lea.vmem [#allocation14], %s4916_s2  ;;  %s5027_s18 = sshll.u32 %s4916_s2, 5 }
  0x86   : > { %3890 = dma.hbm_to_vmem [thread:$0]  (!%p5837_p12), %s629_s21, 16, %s632_s24, %s4968_s13  }
  0x87   : > { %s648_s30 = sshll.u32 %s641_s22, 4  ;;  %s649_s30 = int_to_ptr.vmem [resolvable:$true] %s648_s30 }
  0x8a   : > { %s5023_s16 = scalar_lea.hbm %s5838_s5, %s4999_s0  ;;  %s4167_s1 = scalar_lea.hbm %s5838_s5, 48 }
  0x8b   : > { %s4162_s3 = scalar_lea.hbm %s5023_s16, 16  ;;  %p4168_p6 = scmp.lt.u32.totalorder %s5023_s16, %s5838_s5 }
  0x8c   : > { %p4163_p1 = scmp.ne.s32.totalorder %s5023_s16, %s4162_s3  ;;  %p4169_p10 = scmp.lt.u32.totalorder %s4167_s1, %s4162_s3 }
  0x8d   : > { %p4171_p4 = scmp.lt.u32.totalorder %s4162_s3, %s5023_s16 }
  0x8e   : > { %p4165_p5 = pnand %p4163_p1, %p4974_p2  ;;  %p4170_p11 = por %p4169_p10, %p4168_p6 }
  0x90   : > { %p4166_p0 = pneg %p4165_p5  ;;  %p4172_p7 = por %p4171_p4, %p4170_p11 }
  0x92   : > { %p4173_p8 = pnand %p4172_p7, %p4166_p0 }
  0x94   : > { %4176 = shalt.err (!%p4173_p8)
}
  0x95   : > { %s4177_s15 = scalar_lea.vmem %s649_s30, 16  ;;  %s4710_s22 = smov [#allocation14]  }
  0x96   : > { %p4178_p13 = scmp.ne.s32.totalorder %s649_s30, %s4177_s15  ;;  %s4182_s4 = sshll.u32 %s4710_s22, 4  ;;  %s4183_s4 = int_to_ptr.vmem [resolvable:$false] %s4182_s4 }
  0x97   : > { %s4184_s24 = scalar_lea.vmem %s4183_s4, 32  ;;  %p4185_p1 = scmp.lt.s32.totalorder %s649_s30, %s4183_s4 }
  0x98   : > { %p4180_p3 = pnand %p4178_p13, %p4974_p2  ;;  %p4186_p5 = scmp.lt.s32.totalorder %s4184_s24, %s4177_s15 }
  0x9a   : > { %p4181_p9 = pneg %p4180_p3  ;;  %p4187_p12 = por %p4186_p5, %p4185_p1 }
  0x9c   : > { %p4188_p6 = pnand %p4187_p12, %p4181_p9 }
  0x9e   : > { %4191 = shalt.err (!%p4188_p6)
}
  0x9f   : > { %p5839_p10 = scmp.ne.s32.totalorder %s5827_s23, 0  ;;  %s5048_s3 = sshll.u32 %s4698_s28, 9 }
  0xa0   : > { %s659_s21 = scalar_lea.vmem [#allocation15], %s5027_s18  ;;  %s5840_s6 = sld [smem:[#allocation51_spill]] }
  0xa1   : > { %3893 = dma.hbm_to_vmem [thread:$0]  (!%p5839_p10), %s5023_s16, 16, %s649_s30, %s4968_s13  }
  0xa2   : > { %s666_s1 = sshll.u32 %s659_s21, 4  ;;  %s5057_s1 = int_to_ptr.vmem [resolvable:$true] %s666_s1 }
  0xa6   : > { %s5055_s4 = scalar_lea.hbm %s5840_s6, %s5048_s3  ;;  %s4197_s22 = scalar_lea.hbm %s5840_s6, 1536 }
  0xa7   : > { %s4192_s15 = scalar_lea.hbm %s5055_s4, 512  ;;  %p4198_p4 = scmp.lt.u32.totalorder %s5055_s4, %s5840_s6 }
  0xa8   : > { %p4193_p12 = scmp.ne.s32.totalorder %s5055_s4, %s4192_s15  ;;  %p4199_p7 = scmp.lt.u32.totalorder %s4197_s22, %s4192_s15 }
  0xa9   : > { %p4201_p13 = scmp.lt.u32.totalorder %s4192_s15, %s5055_s4 }
  0xaa   : > { %p4195_p0 = pnand %p4193_p12, %p4974_p2  ;;  %p4200_p8 = por %p4199_p7, %p4198_p4 }
  0xac   : > { %p4196_p11 = pneg %p4195_p0  ;;  %p4202_p3 = por %p4201_p13, %p4200_p8 }
  0xae   : > { %p4203_p9 = pnand %p4202_p3, %p4196_p11 }
  0xb0   : > { %4206 = shalt.err (!%p4203_p9)
}
  0xb1   : > { %s4207_s17 = scalar_lea.vmem %s5057_s1, 512  ;;  %s4711_s19 = smov [#allocation15]  }
  0xb2   : > { %p4208_p1 = scmp.ne.s32.totalorder %s5057_s1, %s4207_s17  ;;  %s4212_s16 = sshll.u32 %s4711_s19, 4  ;;  %s4213_s16 = int_to_ptr.vmem [resolvable:$false] %s4212_s16 }
  0xb3   : > { %s4214_s30 = scalar_lea.vmem %s4213_s16, 1024  ;;  %p4215_p12 = scmp.lt.s32.totalorder %s5057_s1, %s4213_s16 }
  0xb4   : > { %p4210_p5 = pnand %p4208_p1, %p4974_p2  ;;  %p4216_p0 = scmp.lt.s32.totalorder %s4214_s30, %s4207_s17 }
  0xb6   : > { %p4211_p6 = pneg %p4210_p5  ;;  %p4217_p4 = por %p4216_p0, %p4215_p12 }
  0xb8   : > { %p4218_p7 = pnand %p4217_p4, %p4211_p6 }
  0xba   : > { %4221 = shalt.err (!%p4218_p7)
}
  0xbb   : > { %s5841_s15 = smov 8   ;;  %s5842_s22 = smov 128  }
  0xbc   : > { %3896 = dma.hbm_to_vmem [thread:$0]  (!%p5839_p10), %s5055_s4, 512, %s5057_s1, %s4968_s13, %s5842_s22, %s5842_s22, %s5841_s15  }
  0xbd   : > { %s5843_s7 = sld [smem:[#allocation52_spill]]  ;;  %s679_s19 = scalar_lea.vmem [#allocation16], %s4916_s2 }
  0xbe   : > { %s686_s16 = sshll.u32 %s679_s19, 4  ;;  %s5844_s8 = sld [smem:[#allocation53_spill]]  ;;  %s687_s16 = int_to_ptr.vmem [resolvable:$true] %s686_s16 }
  0xc3   : > { %s5088_s17 = scalar_lea.hbm %s5843_s7, %s4999_s0  ;;  %s4227_s24 = scalar_lea.hbm %s5843_s7, 48 }
  0xc4   : > { %s5095_s6 = scalar_lea.hbm %s5844_s8, %s5048_s3  ;;  %s4222_s25 = scalar_lea.hbm %s5088_s17, 16 }
  0xc5   : > { %p4223_p11 = scmp.ne.s32.totalorder %s5088_s17, %s4222_s25  ;;  %p4228_p3 = scmp.lt.u32.totalorder %s5088_s17, %s5843_s7 }
  0xc6   : > { %p4229_p9 = scmp.lt.u32.totalorder %s4227_s24, %s4222_s25  ;;  %p4231_p5 = scmp.lt.u32.totalorder %s4222_s25, %s5088_s17 }
  0xc7   : > { %p4225_p8 = pnand %p4223_p11, %p4974_p2 }
  0xc8   : > { %p4230_p1 = por %p4229_p9, %p4228_p3 }
  0xc9   : > { %p4226_p13 = pneg %p4225_p8 }
  0xca   : > { %p4232_p6 = por %p4231_p5, %p4230_p1 }
  0xcc   : > { %p4233_p12 = pnand %p4232_p6, %p4226_p13 }
  0xce   : > { %4236 = shalt.err (!%p4233_p12)
}
  0xcf   : > { %s4237_s5 = scalar_lea.vmem %s687_s16, 16  ;;  %s4712_s19 = smov [#allocation16]  }
  0xd0   : > { %p4238_p0 = scmp.ne.s32.totalorder %s687_s16, %s4237_s5  ;;  %s4242_s30 = sshll.u32 %s4712_s19, 4  ;;  %s4243_s30 = int_to_ptr.vmem [resolvable:$false] %s4242_s30 }
  0xd1   : > { %s4244_s1 = scalar_lea.vmem %s4243_s30, 32  ;;  %p4245_p11 = scmp.lt.s32.totalorder %s687_s16, %s4243_s30 }
  0xd2   : > { %p4240_p4 = pnand %p4238_p0, %p4974_p2  ;;  %p4246_p8 = scmp.lt.s32.totalorder %s4244_s1, %s4237_s5 }
  0xd4   : > { %p4241_p7 = pneg %p4240_p4  ;;  %p4247_p10 = por %p4246_p8, %p4245_p11 }
  0xd6   : > { %p4248_p3 = pnand %p4247_p10, %p4241_p7 }
  0xd8   : > { %4251 = shalt.err (!%p4248_p3)
}
  0xd9   : > { %p5845_p9 = scmp.ne.s32.totalorder %s5827_s23, 0  ;;  %s697_s25 = scalar_lea.vmem [#allocation17], %s5027_s18 }
  0xda   : > { %s704_s20 = sshll.u32 %s697_s25, 4  ;;  %s5846_s9 = sld [smem:[#allocation54_spill]]  ;;  %s5116_s20 = int_to_ptr.vmem [resolvable:$true] %s704_s20 }
  0xdb   : > { %3899 = dma.hbm_to_vmem [thread:$0]  (!%p5845_p9), %s5088_s17, 16, %s687_s16, %s4968_s13  }
  0xdc   : > { %s4252_s5 = scalar_lea.hbm %s5095_s6, 512  ;;  %s4257_s1 = scalar_lea.hbm %s5844_s8, 1536 }
  0xdd   : > { %p4253_p10 = scmp.ne.s32.totalorder %s5095_s6, %s4252_s5  ;;  %p4258_p5 = scmp.lt.u32.totalorder %s5095_s6, %s5844_s8 }
  0xde   : > { %p4259_p6 = scmp.lt.u32.totalorder %s4257_s1, %s4252_s5  ;;  %p4261_p0 = scmp.lt.u32.totalorder %s4252_s5, %s5095_s6 }
  0xdf   : > { %p4255_p13 = pnand %p4253_p10, %p4974_p2 }
  0xe0   : > { %s5122_s21 = scalar_lea.hbm %s5846_s9, %s4999_s0  ;;  %p4260_p12 = por %p4259_p6, %p4258_p5 }
  0xe1   : > { %p4256_p1 = pneg %p4255_p13 }
  0xe2   : > { %p4262_p4 = por %p4261_p0, %p4260_p12 }
  0xe4   : > { %p4263_p7 = pnand %p4262_p4, %p4256_p1 }
  0xe6   : > { %4266 = shalt.err (!%p4263_p7)
}
  0xe7   : > { %s4267_s16 = scalar_lea.vmem %s5116_s20, 512  ;;  %s4713_s25 = smov [#allocation17]  }
  0xe8   : > { %p4268_p11 = scmp.ne.s32.totalorder %s5116_s20, %s4267_s16  ;;  %s4272_s4 = sshll.u32 %s4713_s25, 4  ;;  %s4273_s4 = int_to_ptr.vmem [resolvable:$false] %s4272_s4 }
  0xe9   : > { %s4274_s7 = scalar_lea.vmem %s4273_s4, 1024  ;;  %p4275_p10 = scmp.lt.s32.totalorder %s5116_s20, %s4273_s4 }
  0xea   : > { %p4270_p8 = pnand %p4268_p11, %p4974_p2  ;;  %p4276_p13 = scmp.lt.s32.totalorder %s4274_s7, %s4267_s16 }
  0xec   : > { %p4271_p3 = pneg %p4270_p8  ;;  %p4277_p5 = por %p4276_p13, %p4275_p10 }
  0xee   : > { %p4278_p6 = pnand %p4277_p5, %p4271_p3 }
  0xf0   : > { %4281 = shalt.err (!%p4278_p6)
}
  0xf1   : > { %3902 = dma.hbm_to_vmem [thread:$0]  (!%p5845_p9), %s5095_s6, 512, %s5116_s20, %s4968_s13, %s5842_s22, %s5842_s22, %s5841_s15  }
  0xf2   : > { %s717_s24 = scalar_lea.vmem [#allocation18], %s4916_s2  ;;  %s5154_s1 = scalar_lea.hbm %s5746_s10, %s4999_s0 }
  0xf3   : > { %s724_s5 = sshll.u32 %s717_s24, 4  ;;  %s4282_s17 = scalar_lea.hbm %s5122_s21, 16  ;;  %s725_s5 = int_to_ptr.vmem [resolvable:$true] %s724_s5 }
  0xf4   : > { %p4283_p1 = scmp.ne.s32.totalorder %s5122_s21, %s4282_s17  ;;  %s4287_s4 = scalar_lea.hbm %s5846_s9, 48 }
  0xf5   : > { %p4288_p4 = scmp.lt.u32.totalorder %s5122_s21, %s5846_s9  ;;  %p4289_p7 = scmp.lt.u32.totalorder %s4287_s4, %s4282_s17 }
  0xf6   : > { %p4285_p12 = pnand %p4283_p1, %p4974_p2  ;;  %p4291_p8 = scmp.lt.u32.totalorder %s4282_s17, %s5122_s21 }
  0xf7   : > { %p4290_p11 = por %p4289_p7, %p4288_p4 }
  0xf8   : > { %p4286_p0 = pneg %p4285_p12 }
  0xf9   : > { %p4292_p3 = por %p4291_p8, %p4290_p11 }
  0xfb   : > { %p4293_p10 = pnand %p4292_p3, %p4286_p0 }
  0xfd   : > { %4296 = shalt.err (!%p4293_p10)
}
  0xfe   : > { %s4297_s6 = scalar_lea.vmem %s725_s5, 16  ;;  %s4714_s20 = smov [#allocation18]  }
  0xff   : > { %p4298_p13 = scmp.ne.s32.totalorder %s725_s5, %s4297_s6  ;;  %s4302_s24 = sshll.u32 %s4714_s20, 4  ;;  %s4303_s24 = int_to_ptr.vmem [resolvable:$false] %s4302_s24 }
 0x100   : > { %s4304_s19 = scalar_lea.vmem %s4303_s24, 32  ;;  %p4305_p1 = scmp.lt.s32.totalorder %s725_s5, %s4303_s24 }
 0x101   : > { %p4300_p5 = pnand %p4298_p13, %p4974_p2  ;;  %p4306_p12 = scmp.lt.s32.totalorder %s4304_s19, %s4297_s6 }
 0x103   : > { %p4301_p6 = pneg %p4300_p5  ;;  %p4307_p9 = por %p4306_p12, %p4305_p1 }
 0x105   : > { %p4308_p4 = pnand %p4307_p9, %p4301_p6 }
 0x107   : > { %4311 = shalt.err (!%p4308_p4)
}
 0x108   : > { %p5847_p7 = scmp.ne.s32.totalorder %s5827_s23, 0  ;;  %s734_s8 = scalar_lea.vmem [#allocation19], %s4916_s2 }
 0x109   : > { %s741_s30 = sshll.u32 %s734_s8, 4  ;;  %s5179_s25 = scalar_lea.hbm %s5747_s11, %s4999_s0  ;;  %s742_s30 = int_to_ptr.vmem [resolvable:$true] %s741_s30 }
 0x10a   : > { %3905 = dma.hbm_to_vmem [thread:$0]  (!%p5847_p7), %s5122_s21, 16, %s725_s5, %s4968_s13  }
 0x10b   : > { %s4312_s4 = scalar_lea.hbm %s5154_s1, 16  ;;  %s4317_s20 = scalar_lea.hbm %s5746_s10, 48 }
 0x10c   : > { %p4313_p9 = scmp.ne.s32.totalorder %s5154_s1, %s4312_s4  ;;  %p4318_p8 = scmp.lt.u32.totalorder %s5154_s1, %s5746_s10 }
 0x10d   : > { %p4319_p3 = scmp.lt.u32.totalorder %s4317_s20, %s4312_s4  ;;  %p4321_p13 = scmp.lt.u32.totalorder %s4312_s4, %s5154_s1 }
 0x10e   : > { %p4315_p0 = pnand %p4313_p9, %p4974_p2 }
 0x10f   : > { %p4320_p10 = por %p4319_p3, %p4318_p8 }
 0x110   : > { %p4316_p11 = pneg %p4315_p0 }
 0x111   : > { %p4322_p5 = por %p4321_p13, %p4320_p10 }
 0x113   : > { %p4323_p6 = pnand %p4322_p5, %p4316_p11 }
 0x115   : > { %4326 = shalt.err (!%p4323_p6)
}
 0x116   : > { %s4327_s21 = scalar_lea.vmem %s742_s30, 16  ;;  %s4715_s5 = smov [#allocation19]  }
 0x117   : > { %p4328_p1 = scmp.ne.s32.totalorder %s742_s30, %s4327_s21  ;;  %s4332_s8 = sshll.u32 %s4715_s5, 4  ;;  %s4333_s8 = int_to_ptr.vmem [resolvable:$false] %s4332_s8 }
 0x118   : > { %s4334_s17 = scalar_lea.vmem %s4333_s8, 32  ;;  %p4335_p9 = scmp.lt.s32.totalorder %s742_s30, %s4333_s8 }
 0x119   : > { %p4330_p12 = pnand %p4328_p1, %p4974_p2  ;;  %p4336_p0 = scmp.lt.s32.totalorder %s4334_s17, %s4327_s21 }
 0x11b   : > { %p4331_p4 = pneg %p4330_p12  ;;  %p4337_p7 = por %p4336_p0, %p4335_p9 }
 0x11d   : > { %p4338_p3 = pnand %p4337_p7, %p4331_p4 }
 0x11f   : > { %4341 = shalt.err (!%p4338_p3)
}
 0x120   : > { %p5848_p8 = scmp.ne.s32.totalorder %s5827_s23, 0  ;;  %s751_s16 = scalar_lea.vmem [#allocation20], %s4916_s2 }
 0x121   : > { %s758_s4 = sshll.u32 %s751_s16, 4  ;;  %s5204_s20 = scalar_lea.hbm %s5748_s12, %s5048_s3  ;;  %s759_s4 = int_to_ptr.vmem [resolvable:$true] %s758_s4 }
 0x122   : > { %3908 = dma.hbm_to_vmem [thread:$0]  (!%p5848_p8), %s5154_s1, 16, %s742_s30, %s4968_s13  }
 0x123   : > { %s4342_s24 = scalar_lea.hbm %s5179_s25, 16  ;;  %s4347_s5 = scalar_lea.hbm %s5747_s11, 48 }
 0x124   : > { %p4343_p7 = scmp.ne.s32.totalorder %s5179_s25, %s4342_s24  ;;  %p4348_p13 = scmp.lt.u32.totalorder %s5179_s25, %s5747_s11 }
 0x125   : > { %p4349_p5 = scmp.lt.u32.totalorder %s4347_s5, %s4342_s24  ;;  %p4351_p1 = scmp.lt.u32.totalorder %s4342_s24, %s5179_s25 }
 0x126   : > { %p4345_p11 = pnand %p4343_p7, %p4974_p2 }
 0x127   : > { %p4350_p6 = por %p4349_p5, %p4348_p13 }
 0x128   : > { %p4346_p10 = pneg %p4345_p11 }
 0x129   : > { %p4352_p12 = por %p4351_p1, %p4350_p6 }
 0x12b   : > { %p4353_p4 = pnand %p4352_p12, %p4346_p10 }
 0x12d   : > { %4356 = shalt.err (!%p4353_p4)
}
 0x12e   : > { %s4357_s3 = scalar_lea.vmem %s759_s4, 16  ;;  %s4716_s1 = smov [#allocation20]  }
 0x12f   : > { %p4358_p9 = scmp.ne.s32.totalorder %s759_s4, %s4357_s3  ;;  %s4362_s30 = sshll.u32 %s4716_s1, 4  ;;  %s4363_s30 = int_to_ptr.vmem [resolvable:$false] %s4362_s30 }
 0x130   : > { %s4364_s16 = scalar_lea.vmem %s4363_s30, 32  ;;  %p4365_p7 = scmp.lt.s32.totalorder %s759_s4, %s4363_s30 }
 0x131   : > { %p4360_p0 = pnand %p4358_p9, %p4974_p2  ;;  %p4366_p11 = scmp.lt.s32.totalorder %s4364_s16, %s4357_s3 }
 0x133   : > { %p4361_p3 = pneg %p4360_p0  ;;  %p4367_p8 = por %p4366_p11, %p4365_p7 }
 0x135   : > { %p4368_p5 = pnand %p4367_p8, %p4361_p3 }
 0x137   : > { %4371 = shalt.err (!%p4368_p5)
}
 0x138   : > { %p5849_p13 = scmp.ne.s32.totalorder %s5827_s23, 0  ;;  %s769_s7 = scalar_lea.vmem [#allocation21], %s5027_s18 }
 0x139   : > { %s776_s6 = sshll.u32 %s769_s7, 4  ;;  %s5850_s21 = sld [smem:[#allocation55_spill]]  ;;  %s5225_s6 = int_to_ptr.vmem [resolvable:$true] %s776_s6 }
 0x13a   : > { %3911 = dma.hbm_to_vmem [thread:$0]  (!%p5849_p13), %s5179_s25, 16, %s759_s4, %s4968_s13  }
 0x13b   : > { %s4372_s8 = scalar_lea.hbm %s5204_s20, 512  ;;  %s4377_s1 = scalar_lea.hbm %s5748_s12, 1536 }
 0x13c   : > { %p4373_p8 = scmp.ne.s32.totalorder %s5204_s20, %s4372_s8  ;;  %p4378_p1 = scmp.lt.u32.totalorder %s5204_s20, %s5748_s12 }
 0x13d   : > { %p4379_p12 = scmp.lt.u32.totalorder %s4377_s1, %s4372_s8  ;;  %p4381_p9 = scmp.lt.u32.totalorder %s4372_s8, %s5204_s20 }
 0x13e   : > { %p4375_p10 = pnand %p4373_p8, %p4974_p2 }
 0x13f   : > { %s5231_s5 = scalar_lea.hbm %s5850_s21, %s4999_s0  ;;  %p4380_p4 = por %p4379_p12, %p4378_p1 }
 0x140   : > { %p4376_p6 = pneg %p4375_p10 }
 0x141   : > { %p4382_p0 = por %p4381_p9, %p4380_p4 }
 0x143   : > { %p4383_p3 = pnand %p4382_p0, %p4376_p6 }
 0x145   : > { %4386 = shalt.err (!%p4383_p3)
}
 0x146   : > { %s4387_s18 = scalar_lea.vmem %s5225_s6, 512  ;;  %s4717_s4 = smov [#allocation21]  }
 0x147   : > { %p4388_p7 = scmp.ne.s32.totalorder %s5225_s6, %s4387_s18  ;;  %s4392_s16 = sshll.u32 %s4717_s4, 4  ;;  %s4393_s16 = int_to_ptr.vmem [resolvable:$false] %s4392_s16 }
 0x148   : > { %s4394_s7 = scalar_lea.vmem %s4393_s16, 1024  ;;  %p4395_p8 = scmp.lt.s32.totalorder %s5225_s6, %s4393_s16 }
 0x149   : > { %p4390_p11 = pnand %p4388_p7, %p4974_p2  ;;  %p4396_p10 = scmp.lt.s32.totalorder %s4394_s7, %s4387_s18 }
 0x14b   : > { %p4391_p5 = pneg %p4390_p11  ;;  %p4397_p1 = por %p4396_p10, %p4395_p8 }
 0x14d   : > { %p4398_p12 = pnand %p4397_p1, %p4391_p5 }
 0x14f   : > { %4401 = shalt.err (!%p4398_p12)
}
 0x150   : > { %3914 = dma.hbm_to_vmem [thread:$0]  (!%p5849_p13), %s5204_s20, 512, %s5225_s6, %s4968_s13, %s5842_s22, %s5842_s22, %s5841_s15  }
 0x151   : > { %s789_s24 = scalar_lea.vmem [#allocation22], %s4916_s2  ;;  %s4718_s8 = smov [#allocation10]  }
 0x152   : > { %s796_s19 = sshll.u32 %s789_s24, 4  ;;  %s557_s17 = sshll.u32 %s4718_s8, 4  ;;  %s5259_s19 = int_to_ptr.vmem [resolvable:$true] %s796_s19  ;;  %s558_s17 = int_to_ptr.vmem [resolvable:$true] %s557_s17 }
 0x153   : > { %s4402_s3 = scalar_lea.hbm %s5231_s5, 16  ;;  %s4407_s25 = scalar_lea.hbm %s5850_s21, 48 }
 0x154   : > { %p4403_p6 = scmp.ne.s32.totalorder %s5231_s5, %s4402_s3  ;;  %p4408_p0 = scmp.lt.u32.totalorder %s5231_s5, %s5850_s21 }
 0x155   : > { %p4409_p3 = scmp.lt.u32.totalorder %s4407_s25, %s4402_s3  ;;  %p4411_p11 = scmp.lt.u32.totalorder %s4402_s3, %s5231_s5 }
 0x156   : > { %p4405_p4 = pnand %p4403_p6, %p4974_p2 }
 0x157   : > { %p4410_p7 = por %p4409_p3, %p4408_p0 }
 0x158   : > { %p4406_p9 = pneg %p4405_p4 }
 0x159   : > { %p4412_p5 = por %p4411_p11, %p4410_p7 }
 0x15b   : > { %p4413_p8 = pnand %p4412_p5, %p4406_p9 }
 0x15d   : > { %4416 = shalt.err (!%p4413_p8)
}
 0x15e   : > { %s4417_s20 = scalar_lea.vmem %s5259_s19, 16  ;;  %s4719_s6 = smov [#allocation22]  }
 0x15f   : > { %p4418_p10 = scmp.ne.s32.totalorder %s5259_s19, %s4417_s20  ;;  %s4422_s16 = sshll.u32 %s4719_s6, 4  ;;  %s4423_s16 = int_to_ptr.vmem [resolvable:$false] %s4422_s16 }
 0x160   : > { %s4424_s7 = scalar_lea.vmem %s4423_s16, 32  ;;  %p4425_p6 = scmp.lt.s32.totalorder %s5259_s19, %s4423_s16 }
 0x161   : > { %p4420_p1 = pnand %p4418_p10, %p4974_p2  ;;  %p4426_p4 = scmp.lt.s32.totalorder %s4424_s7, %s4417_s20 }
 0x163   : > { %p4421_p12 = pneg %p4420_p1  ;;  %p4427_p0 = por %p4426_p4, %p4425_p6 }
 0x165   : > { %p4428_p3 = pnand %p4427_p0, %p4421_p12 }
 0x167   : > { %4431 = shalt.err (!%p4428_p3)
}
 0x168   : > { %3917 = dma.hbm_to_vmem [thread:$0]  (!%p5849_p13), %s5231_s5, 16, %s5259_s19, %s4968_s13  }
 0x169   : > { %s5851_s3 = sld [smem:[#allocation47_spill]]  ;;  %p5853_p7 = scmp.ne.s32.totalorder %s5830_s26, 0 }
 0x16f   : > { %s5852_s1 = smov %s5851_s3  ;;  %s4432_s30 = scalar_lea.hbm %s5851_s3, 128 }
 0x170   : > { %p4433_p9 = scmp.ne.s32.totalorder %s5852_s1, %s4432_s30  ;;  %p4439_p8 = scmp.lt.u32.totalorder %s4432_s30, %s5852_s1 }
 0x172   : > { %p4435_p11 = pnand %p4433_p9, %p5853_p7 }
 0x174   : > { %p4436_p5 = pneg %p4435_p11 }
 0x176   : > { %p4441_p10 = pnand %p4439_p8, %p4436_p5 }
 0x178   : > { %4444 = shalt.err (!%p4441_p10)
}
 0x179   : > { %s4445_s6 = scalar_lea.vmem %s558_s17, 128  ;;  %p4453_p4 = scmp.lt.s32.totalorder %s558_s17, %s558_s17 }
 0x17a   : > { %p4446_p1 = scmp.ne.s32.totalorder %s558_s17, %s4445_s6  ;;  %p4454_p0 = scmp.lt.s32.totalorder %s4445_s6, %s4445_s6 }
 0x17c   : > { %p4448_p12 = pnand %p4446_p1, %p5853_p7  ;;  %p4455_p3 = por %p4454_p0, %p4453_p4 }
 0x17e   : > { %p4449_p6 = pneg %p4448_p12 }
 0x180   : > { %p4456_p13 = pnand %p4455_p3, %p4449_p6 }
 0x182   : > { %4459 = shalt.err (!%p4456_p13)
}
 0x183   : > { %s5854_s5 = sld [smem:[#allocation42_spill]]  ;;  %s4720_s7 = smov [#allocation26]  }
 0x184   : > { %s579_s24 = sshll.u32 %s4720_s7, 4  ;;  %s3454_s8 = sshll.u32 %s4916_s2, 7  ;;  %s580_s24 = int_to_ptr.vmem [resolvable:$true] %s579_s24 }
 0x185   : > { %s5856_s25 = sld [smem:[#allocation59_spill]] }
 0x189   : > { %p5855_p9 = scmp.ne.s32.totalorder %s5854_s5, 0 }
 0x18b   : > { %3874 = dma.hbm_to_vmem [thread:$0]  (!%p5855_p9), %s5852_s1, 128, %s558_s17, [#allocation11]  }
 0x18c   : > { %s4460_s18 = scalar_lea.hbm %s5856_s25, 16 }
 0x18d   : > { %p4461_p13 = scmp.ne.s32.totalorder %s5856_s25, %s4460_s18  ;;  %p4467_p8 = scmp.lt.u32.totalorder %s4460_s18, %s5856_s25 }
 0x18f   : > { %p4463_p11 = pnand %p4461_p13, %p5853_p7 }
 0x191   : > { %p4464_p5 = pneg %p4463_p11 }
 0x193   : > { %p4469_p10 = pnand %p4467_p8, %p4464_p5 }
 0x195   : > { %4472 = shalt.err (!%p4469_p10)
}
 0x196   : > { %s4473_s17 = scalar_lea.vmem %s580_s24, 16  ;;  %s4480_s16 = scalar_lea.vmem %s580_s24, 32 }
 0x197   : > { %p4474_p1 = scmp.ne.s32.totalorder %s580_s24, %s4473_s17  ;;  %p4481_p4 = scmp.lt.s32.totalorder %s580_s24, %s580_s24 }
 0x198   : > { %p4482_p0 = scmp.lt.s32.totalorder %s4480_s16, %s4473_s17 }
 0x199   : > { %p4476_p12 = pnand %p4474_p1, %p5853_p7 }
 0x19a   : > { %p4483_p3 = por %p4482_p0, %p4481_p4 }
 0x19b   : > { %p4477_p6 = pneg %p4476_p12 }
 0x19d   : > { %p4484_p2 = pnand %p4483_p3, %p4477_p6 }
 0x19f   : > { %4487 = shalt.err (!%p4484_p2)
}
 0x1a0   : > { %3880 = dma.hbm_to_vmem [thread:$0]  (!%p5855_p9), %s5856_s25, 16, %s580_s24, [#allocation27]  }
 0x1a1   : > { %s3523_s30 = sshll.u32 %s4698_s28, 11  ;;  %s807_s18 = scalar_lea.vmem [#allocation23], %s3454_s8 }
 0x1a2   : > { %s814_s4 = sshll.u32 %s807_s18, 4  ;;  %s5857_s19 = sld [smem:[#allocation56_spill]]  ;;  %s5326_s4 = int_to_ptr.vmem [resolvable:$true] %s814_s4 }
 0x1a3   : > { %p5858_p13 = scmp.ne.s32.totalorder %s5835_s14, 0 }
 0x1a8   : > { %s5324_s1 = scalar_lea.hbm %s5857_s19, %s3523_s30  ;;  %s4493_s8 = scalar_lea.hbm %s5857_s19, 6144 }
 0x1a9   : > { %s4488_s17 = scalar_lea.hbm %s5324_s1, 2048  ;;  %p4494_p8 = scmp.lt.u32.totalorder %s5324_s1, %s5857_s19 }
 0x1aa   : > { %p4489_p2 = scmp.ne.s32.totalorder %s5324_s1, %s4488_s17  ;;  %p4495_p10 = scmp.lt.u32.totalorder %s4493_s8, %s4488_s17 }
 0x1ab   : > { %p4497_p12 = scmp.lt.u32.totalorder %s4488_s17, %s5324_s1 }
 0x1ac   : > { %p4491_p11 = pnand %p4489_p2, %p5858_p13  ;;  %p4496_p1 = por %p4495_p10, %p4494_p8 }
 0x1ae   : > { %p4492_p5 = pneg %p4491_p11  ;;  %p4498_p6 = por %p4497_p12, %p4496_p1 }
 0x1b0   : > { %p4499_p4 = pnand %p4498_p6, %p4492_p5 }
 0x1b2   : > { %4502 = shalt.err (!%p4499_p4)
}
 0x1b3   : > { %s4503_s30 = scalar_lea.vmem %s5326_s4, 2048  ;;  %s4721_s18 = smov [#allocation23]  }
 0x1b4   : > { %p4504_p0 = scmp.ne.s32.totalorder %s5326_s4, %s4503_s30  ;;  %s4508_s20 = sshll.u32 %s4721_s18, 4  ;;  %s4509_s20 = int_to_ptr.vmem [resolvable:$false] %s4508_s20 }
 0x1b5   : > { %s4510_s6 = scalar_lea.vmem %s4509_s20, 4096  ;;  %p4511_p11 = scmp.lt.s32.totalorder %s5326_s4, %s4509_s20 }
 0x1b6   : > { %p4506_p3 = pnand %p4504_p0, %p5858_p13  ;;  %p4512_p9 = scmp.lt.s32.totalorder %s4510_s6, %s4503_s30 }
 0x1b8   : > { %p4507_p2 = pneg %p4506_p3  ;;  %p4513_p8 = por %p4512_p9, %p4511_p11 }
 0x1ba   : > { %p4514_p10 = pnand %p4513_p8, %p4507_p2 }
 0x1bc   : > { %4517 = shalt.err (!%p4514_p10)
}
 0x1bd   : > { %p5859_p5 = scmp.ne.s32.totalorder %s5827_s23, 0  ;;  %s4722_s17 = smov [#allocation25]  }
 0x1be   : > { %s568_s24 = sshll.u32 %s4722_s17, 4  ;;  %s4723_s16 = smov [#allocation28]   ;;  %s569_s24 = int_to_ptr.vmem [resolvable:$true] %s568_s24 }
 0x1bf   : > { %3920 = dma.hbm_to_vmem [thread:$0]  (!%p5859_p5), %s5324_s1, 2048, %s5326_s4, %s4968_s13, %s5842_s22, %s5842_s22, %s5841_s15  }
 0x1c0   : > { %s589_s8 = sshll.u32 %s4723_s16, 4  ;;  %s5860_s30 = sld [smem:[#allocation58_spill]]  ;;  %s5353_s8 = int_to_ptr.vmem [resolvable:$true] %s589_s8 }
 0x1c6   : > { %s4518_s18 = scalar_lea.hbm %s5860_s30, 16 }
 0x1c7   : > { %p4519_p9 = scmp.ne.s32.totalorder %s5860_s30, %s4518_s18  ;;  %p4525_p6 = scmp.lt.u32.totalorder %s4518_s18, %s5860_s30 }
 0x1c9   : > { %p4521_p1 = pnand %p4519_p9, %p5853_p7 }
 0x1cb   : > { %p4522_p12 = pneg %p4521_p1 }
 0x1cd   : > { %p4527_p4 = pnand %p4525_p6, %p4522_p12 }
 0x1cf   : > { %4530 = shalt.err (!%p4527_p4)
}
 0x1d0   : > { %s4531_s4 = scalar_lea.vmem %s569_s24, 16  ;;  %s4538_s17 = scalar_lea.vmem %s569_s24, 32 }
 0x1d1   : > { %p4532_p0 = scmp.ne.s32.totalorder %s569_s24, %s4531_s4  ;;  %p4539_p11 = scmp.lt.s32.totalorder %s569_s24, %s569_s24 }
 0x1d2   : > { %p4540_p8 = scmp.lt.s32.totalorder %s4538_s17, %s4531_s4 }
 0x1d3   : > { %p4534_p3 = pnand %p4532_p0, %p5853_p7 }
 0x1d4   : > { %p4541_p10 = por %p4540_p8, %p4539_p11 }
 0x1d5   : > { %p4535_p2 = pneg %p4534_p3 }
 0x1d7   : > { %p4542_p5 = pnand %p4541_p10, %p4535_p2 }
 0x1d9   : > { %4545 = shalt.err (!%p4542_p5)
}
 0x1da   : > { %p5861_p9 = scmp.ne.s32.totalorder %s5854_s5, 0  ;;  %s5862_s18 = sld [smem:[#allocation60_spill]] }
 0x1dc   : > { %3877 = dma.hbm_to_vmem [thread:$0]  (!%p5861_p9), %s5860_s30, 16, %s569_s24, [#allocation11]  }
 0x1e0   : > { %s4546_s20 = scalar_lea.hbm %s5862_s18, 512 }
 0x1e1   : > { %p4547_p1 = scmp.ne.s32.totalorder %s5862_s18, %s4546_s20  ;;  %p4553_p5 = scmp.lt.u32.totalorder %s4546_s20, %s5862_s18 }
 0x1e3   : > { %p4549_p12 = pnand %p4547_p1, %p5853_p7 }
 0x1e5   : > { %p4550_p6 = pneg %p4549_p12 }
 0x1e7   : > { %p4555_p4 = pnand %p4553_p5, %p4550_p6 }
 0x1e9   : > { %4558 = shalt.err (!%p4555_p4)
}
 0x1ea   : > { %s4559_s24 = scalar_lea.vmem %s5353_s8, 512  ;;  %p4567_p11 = scmp.lt.s32.totalorder %s5353_s8, %s5353_s8 }
 0x1eb   : > { %p4560_p0 = scmp.ne.s32.totalorder %s5353_s8, %s4559_s24  ;;  %p4568_p8 = scmp.lt.s32.totalorder %s4559_s24, %s4559_s24 }
 0x1ed   : > { %p4562_p3 = pnand %p4560_p0, %p5853_p7  ;;  %p4569_p10 = por %p4568_p8, %p4567_p11 }
 0x1ef   : > { %p4563_p2 = pneg %p4562_p3 }
 0x1f1   : > { %p4570_p1 = pnand %p4569_p10, %p4563_p2 }
 0x1f3   : > { %4573 = shalt.err (!%p4570_p1)
}
 0x1f4   : > { %3883 = dma.hbm_to_vmem [thread:$0]  (!%p5861_p9), %s5862_s18, 512, %s5353_s8, [#allocation27], %s5842_s22, %s5842_s22, %s5841_s15  }
 0x1f5   : > { %s5863_s3 = sld [smem:[#allocation57_spill]]  ;;  %s827_s5 = scalar_lea.vmem [#allocation24], %s4916_s2 }
 0x1f6   : > { %s834_s1 = sshll.u32 %s827_s5, 4  ;;  %s835_s1 = int_to_ptr.vmem [resolvable:$true] %s834_s1 }
 0x1fb   : > { %s5864_s20 = smov %s5863_s3  ;;  %s5403_s6 = scalar_lea.hbm %s5863_s3, %s4999_s0 }
 0x1fc   : > { %s4574_s4 = scalar_lea.hbm %s5403_s6, 16  ;;  %s4579_s15 = scalar_lea.hbm %s5864_s20, 48 }
 0x1fd   : > { %p4575_p7 = scmp.ne.s32.totalorder %s5403_s6, %s4574_s4  ;;  %p4580_p9 = scmp.lt.u32.totalorder %s5403_s6, %s5864_s20 }
 0x1fe   : > { %p4581_p5 = scmp.lt.u32.totalorder %s4579_s15, %s4574_s4  ;;  %p4583_p0 = scmp.lt.u32.totalorder %s4574_s4, %s5403_s6 }
 0x1ff   : > { %p4577_p12 = pnand %p4575_p7, %p5858_p13 }
 0x200   : > { %p4582_p4 = por %p4581_p5, %p4580_p9 }
 0x201   : > { %p4578_p6 = pneg %p4577_p12 }
 0x202   : > { %p4584_p3 = por %p4583_p0, %p4582_p4 }
 0x204   : > { %p4585_p2 = pnand %p4584_p3, %p4578_p6 }
 0x206   : > { %4588 = shalt.err (!%p4585_p2)
}
 0x207   : > { %s4589_s2 = scalar_lea.vmem %s835_s1, 16  ;;  %s4724_s0 = smov [#allocation24]  }
 0x208   : > { %p4590_p11 = scmp.ne.s32.totalorder %s835_s1, %s4589_s2  ;;  %s4594_s16 = sshll.u32 %s4724_s0, 4  ;;  %s4595_s16 = int_to_ptr.vmem [resolvable:$false] %s4594_s16 }
 0x209   : > { %s4596_s7 = scalar_lea.vmem %s4595_s16, 32  ;;  %p4597_p1 = scmp.lt.s32.totalorder %s835_s1, %s4595_s16 }
 0x20a   : > { %p4592_p8 = pnand %p4590_p11, %p5858_p13  ;;  %p4598_p7 = scmp.lt.s32.totalorder %s4596_s7, %s4589_s2 }
 0x20c   : > { %p4593_p10 = pneg %p4592_p8  ;;  %p4599_p12 = por %p4598_p7, %p4597_p1 }
 0x20e   : > { %p4600_p5 = pnand %p4599_p12, %p4593_p10 }
 0x210   : > { %4603 = shalt.err (!%p4600_p5)
}
 0x211   : > { %p5865_p9 = scmp.ne.s32.totalorder %s5827_s23, 0  ;;  %s5866_s26 = sld [smem:[#allocation41_spill]] }
 0x213   : > { %3923 = dma.hbm_to_vmem [thread:$0]  (!%p5865_p9), %s5403_s6, 16, %s835_s1, %s4968_s13  }
 0x217   : > { %p5867_p6 = scmp.ne.s32.totalorder %s5866_s26, 0 }
 0x218   : > { %s5868_s14 = sld [smem:[#allocation39_spill]] (!%p5867_p6) }
 0x219   : > { %843 = sbr.rel (%p5867_p6) target bundleno = 5294 (0x14ae), region = 92 }
 0x21e   : > { %p5869_p13 = scmp.eq.s32.totalorder (!%p5867_p6), %s5868_s14, 0 }
 0x220   : > { %4657 = dma.done.wait (%p5869_p13), [#allocation8], 256   ;;  %p5870_p4 = pmov %p5869_p13 }
 0x222   : > { %4659 = vsyncadd (%p5870_p4), [#allocation8], 4294967040  ;;  %p5871_p0 = pmov %p5870_p4 }
 0x224   : > { %4661 = dma.done.wait (%p5871_p0), [#allocation11], 128   ;;  %p5872_p3 = pmov %p5871_p0 }
 0x225   : > { %s5873_s23 = sld [smem:[#allocation37_spill]]  ;;  %s5874_s9 = sld [smem:[#allocation40_spill]] }
 0x226   : > { %4663 = vsyncadd (%p5872_p3), [#allocation11], 4294967168  ;;  %s853_s3 = sand.u32 1, %s5868_s14  }
 0x227   : > { %s854_s5 = scalar_lea.sflag [#allocation8], %s853_s3 }
 0x22b   : > { %s5436_s13 = sand.u32 1, %s5873_s23   ;;  %p5875_p2 = scmp.ne.s32.totalorder %s5874_s9, 0 }
 0x22c   : > { %s3461_s6 = sshll.u32 %s5436_s13, 1 }
 0x22d   : > { %s5439_s1 = scalar_lea.vmem [#allocation12], %s3461_s6 }
 0x22e   : > { %4665 = dma.done.wait (%p5875_p2), %s854_s5, 3744  }
 0x22f   : > { %4667 = vsyncadd (%p5875_p2), %s854_s5, 4294963552  ;;  %s3462_s4 = sshll.u32 %s5436_s13, 5  ;;  %s3465_s17 = sshll.u32 %s5436_s13, 7 }
 0x230   : > { %s865_s24 = scalar_lea.vmem [#allocation13], %s5436_s13  ;;  %s873_s15 = scalar_lea.vmem [#allocation14], %s5436_s13 }
 0x231   : > { %s5449_s22 = scalar_lea.vmem [#allocation15], %s3462_s4  ;;  %s890_s8 = scalar_lea.vmem [#allocation16], %s5436_s13 }
 0x232   : > { %s5452_s2 = scalar_lea.vmem [#allocation17], %s3462_s4  ;;  %s907_s0 = scalar_lea.vmem [#allocation18], %s5436_s13 }
 0x233   : > { %s915_s16 = scalar_lea.vmem [#allocation19], %s5436_s13  ;;  %s923_s7 = scalar_lea.vmem [#allocation20], %s5436_s13 }
 0x234   : > { %s5457_s26 = scalar_lea.vmem [#allocation21], %s3462_s4  ;;  %s940_s23 = scalar_lea.vmem [#allocation22], %s5436_s13 }
 0x235   : > { %s5460_s9 = scalar_lea.vmem [#allocation23], %s3465_s17  ;;  %s957_s3 = scalar_lea.vmem [#allocation24], %s5436_s13 }
 0x236   : > { %p5876_p11 = pmov %p5871_p0 }
 0x237   : > { %p5877_p8 = pmov %p5871_p0 }
 0x238   : > { %4669 = dma.done.wait (%p5876_p11), [#allocation11], 16  }
 0x239   : > { %4671 = vsyncadd (%p5877_p8), [#allocation11], 4294967280  ;;  %p5878_p10 = pmov %p5871_p0 }
 0x23a   : > { %p5879_p1 = pmov %p5871_p0 }
 0x23b   : > { %4673 = dma.done.wait (%p5878_p10), [#allocation27], 528  }
 0x23c   : > { %4675 = vsyncadd (%p5879_p1), [#allocation27], 4294966768  ;;  %s5880_s6 = sld [smem:[#allocation38_spill]] }
 0x242   : > { %p3469_p7 = scmp.ne.s32.totalorder %s5880_s6, 0 }
 0x243   : > { %v1074_v0 = vld [vmem:[#allocation7] sm:$0xff] (!%p3469_p7)  ;;  %v1076_v1 = vld [vmem:[#allocation10] sm:$0xff] (!%p3469_p7)  ;;  %vm1079_vm0 = vcmask (!%p3469_p7), 261120   ;;  %v1075_v2 = vld [vmem:[#allocation7 + $0x8] sm:$0xff] (!%p3469_p7)  ;;  %v1082_v3 = vlaneseq (!%p3469_p7)  ;;  %vm1088_vm1 = vcmask (!%p3469_p7), 64512  }
 0x244   : > { %1073 = sbr.rel (%p3469_p7) target bundleno = 587 (0x24b), region = 168  ;;  %v1077_v4 = vadd.f32 (!%p3469_p7), %v1076_v1, %v1074_v0  ;;  %v1078_v5 = vadd.f32 (!%p3469_p7), %v1076_v1, %v1075_v2  ;;  %v4725_v8 = vmov (!%p3469_p7), -1e+30  }
 0x245   : > { %v1083_v6 = vshrl.u32 (!%p3469_p7), %v1082_v3, 7  ;;  %v1085_v7 = vand.u32 (!%p3469_p7), 127, %v1082_v3 }
 0x246   : > { %1080 = vst.msk [vmem:[#allocation2] sm:$0xff] (!%p3469_p7), %vm1079_vm0, %v1077_v4  ;;  %1081 = vst.msk [vmem:[#allocation2 + $0x8] sm:$0xff] (!%p3469_p7), %vm1079_vm0, %v1078_v5 }
 0x247   : > { %vm1086_vm2 = vcmp.le.s32.totalorder (!%p3469_p7), %v1085_v7, %v1083_v6 }
 0x248   : > { %v1087_v9 = vsel (!%p3469_p7), %vm1086_vm2, 0.0, %v4725_v8 }
 0x249   : > { %1089 = vst.msk [vmem:[#allocation3] sm:$0xff] (!%p3469_p7), %vm1088_vm1, %v1087_v9 }
 0x24b PF: > { %s5881_s14 = sld [smem:[#allocation38_spill]] }
 0x251   : > { %p1090_p12 = scmp.ge.s32.totalorder %s5881_s14, 1  ;;  %p1091_p5 = scmp.le.s32.totalorder %s5881_s14, 2 }
 0x253   : > { %p1092_p9 = pnand %p1091_p5, %p1090_p12 }
 0x254   : > { %v1096_v10 = vld [vmem:[%s5439_s1] sm:$0x3] (!%p1092_p9)  ;;  %vm1097_vm3 = vcmask (!%p1092_p9), 254976  }
 0x255   : > { %1095 = sbr.rel (%p1092_p9) target bundleno = 604 (0x25c), region = 172  ;;  %1098 = vst.msk [vmem:[#allocation2 + $0x1] sm:$0x3] (!%p1092_p9), %vm1097_vm3, %v1096_v10  ;;  %1099 = vst.msk [vmem:[#allocation2 + $0x9] sm:$0x3] (!%p1092_p9), %vm1097_vm3, %v1096_v10 }
 0x25c PF: > { %v5475_v11 = vld [vmem:[#allocation2] sm:$0xff]  ;;  %vm1104_vm4 = vcmask 261120   ;;  %v5477_v12 = vld [vmem:[#allocation2 + $0x8] sm:$0xff]  ;;  %v1149_v26 = vld [vmem:[%s5449_s22 + $0x8] sm:$0xff]  ;;  %v4726_v47 = vmov 0.0   ;;  %vm4727_vm5 = vmmov 0  }
 0x25d   : > { %v1105_v13 = vsel %vm1104_vm4, %v5475_v11, 0.0  ;;  %v1108_v14 = vsel %vm1104_vm4, %v5477_v12, 0.0  ;;  %v1148_v25 = vld [vmem:[%s5449_s22] sm:$0xff]  ;;  %v1150_v27 = vld [vmem:[%s5449_s22 + $0x10] sm:$0xff]  ;;  %v1151_v29 = vld [vmem:[%s5449_s22 + $0x18] sm:$0xff]  ;;  %3618 = vmatprep.subr.mxu0 %v4726_v47  ;;  %3620 = vmatprep.mubr.msk.f32.mxu0 %vm4727_vm5, %v4726_v47  ;;  %s4728_s5 = smov 96  }
 0x25e   : > { %1106 = vadd.xlane.f32.xlu0 %v1105_v13  ;;  %v3756_v28 = vpack.c.bf16 %v1149_v26, %v1148_v25  ;;  %v3760_v30 = vpack.c.bf16 %v1151_v29, %v1150_v27  ;;  %v3470_v38 = vld [vmem:[%s865_s24] ss:$0 sm:$0xff]  ;;  %vm1244_vm6 = vcmask 64512   ;;  %v5523_v56 = vld [vmem:[#allocation3] sm:$0xff]  ;;  %s4729_s1 = smov 64   ;;  %s4730_s4 = smov 88  }
 0x25f   : > { %v3471_v40 = vld [vmem:[%s873_s15] ss:$0 sm:$0xff]  ;;  %s4731_s17 = smov 120   ;;  %s4732_s24 = smov 56   ;;  %vm1918_vm7 = vcmask 130112   ;;  %vm2263_vm8 = vcmask 195712  }
 0x260   : > { %3757 = vmatprep.subr.bf16.mxu1 %v3756_v28  ;;  %v3472_v48 = vld [vmem:[%s890_s8] ss:$0 sm:$0xff]  ;;  %s4733_s15 = smov 80   ;;  %s4734_s22 = smov 112   ;;  %vm2608_vm9 = vcmask 261312  }
 0x261   : > { %3759 = vmatpush3.bf16.msra.mxu1 %v3756_v28  ;;  %s4735_s8 = smov 48   ;;  %s4736_s6 = smov 72  }
 0x262   : > { %1109 = vadd.xlane.f32.xlu0 %v1108_v14  ;;  %3761 = vmatprep.subr.bf16.mxu1 %v3760_v30  ;;  %s4737_s14 = smov 104  }
 0x265   : > { %3763 = vmatpush3.bf16.msra.mxu1 %v3760_v30 }
 0x266   : > { %3608 = vmatprep.subr.mxu1 %v4726_v47 }
 0x2eb   : > { %v1107_v15 = vpop.xlane.xlu0 %1106 }
 0x2ec   : > { %v1112_v16 = vmul.f32 0.03125, %v1107_v15 }
 0x2ee   : > { %v1114_v17 = vsub.f32 %v5475_v11, %v1112_v16 }
 0x2ef   : > { %v1110_v18 = vpop.xlane.xlu0 %1109 }
 0x2f0   : > { %v1113_v19 = vmul.f32 0.03125, %v1110_v18  ;;  %v1116_v20 = vmul.f32 %v1114_v17, %v1114_v17 }
 0x2f2   : > { %v1115_v21 = vsub.f32 %v5477_v12, %v1113_v19  ;;  %v1118_v22 = vsel %vm1104_vm4, %v1116_v20, 0.0 }
 0x2f3   : > { %1119 = vadd.xlane.f32.xlu1 %v1118_v22 }
 0x2f4   : > { %v1117_v23 = vmul.f32 %v1115_v21, %v1115_v21 }
 0x2f6   : > { %v1121_v24 = vsel %vm1104_vm4, %v1117_v23, 0.0 }
 0x2f7   : > { %1122 = vadd.xlane.f32.xlu1 %v1121_v24 }
 0x380   : > { %v1120_v31 = vpop.xlane.xlu1 %1119 }
 0x381   : > { %v1124_v32 = vmul.f32 0.03125, %v1120_v31 }
 0x383   : > { %v1126_v33 = vadd.f32 1e-05, %v1124_v32 }
 0x384   : > { %v1123_v34 = vpop.xlane.xlu1 %1122 }
 0x385   : > { %4014 = vrsqrt.f32 %v1126_v33  ;;  %v1125_v35 = vmul.f32 0.03125, %v1123_v34 }
 0x387   : > { %v1127_v36 = vadd.f32 1e-05, %v1125_v35 }
 0x389   : > { %4016 = vrsqrt.f32 %v1127_v36 }
 0x38f   : > { %v4015_v37 = vpop.eup %4014 }
 0x390   : > { %v1130_v39 = vmul.f32 %v4015_v37, %v1114_v17 }
 0x392   : > { %v1138_v41 = vmul.f32 %v3470_v38, %v1130_v39 }
 0x393   : > { %v4017_v42 = vpop.eup %4016 }
 0x394   : > { %v1131_v43 = vmul.f32 %v4017_v42, %v1115_v21  ;;  %v1146_v44 = vadd.f32 %v3471_v40, %v1138_v41 }
 0x396   : > { %v1139_v45 = vmul.f32 %v3470_v38, %v1131_v43  ;;  %3605 = vmatprep.mubr.msk.f32.mxu1 %vm1104_vm4, %v1146_v44 }
 0x398   : > { %v1147_v46 = vadd.f32 %v3471_v40, %v1139_v45 }
 0x39a   : > { %3606 = vmatmul.mubr.msk.f32.vlgmr.msra.gmra.mrb[0].mxu1 %vm1104_vm4, %v1147_v46 }
 0x39b   : > { %3610 = vmatprep.mubr.msk.f32.mxu1 %vm4727_vm5, %v4726_v47 }
 0x46d   : > { %v3607_v49 = vpop.f32.mrb[0].mxu1 }
 0x46e   : > { %v5505_v50 = vadd.f32 %v3607_v49, %v3472_v48  ;;  %v1231_v51 = vpop.f32.mrb[1].mxu1 }
 0x46f   : > { %v5507_v52 = vadd.f32 %v3472_v48, %v1231_v51 }
 0x470   : > { %1320 = vrot.lane.b32.xlu1 %v5505_v50, %s4728_s5 }
 0x471   : > { %1242 = vrot.lane.b32.xlu0 %v5507_v52, %s4728_s5  ;;  %s4738_s5 = smov 40  }
 0x4e2   : > { %v1321_v54 = vpop.permute.xlu1 %1320 }
 0x4e3   : > { %v1243_v53 = vpop.permute.xlu0 %1242 }
 0x4e4   : > { %3609 = vmatpush3.xpose.msk.msra.mxu1 %vm1244_vm6, %v1243_v53 }
 0x4e5   : > { %3613 = vmatprep.subr.mxu1 %v4726_v47 }
 0x4e7   : > { %3611 = vmatmul.mubr.msk.f32.vlgmr.msra.gmra.mrb[2].mxu1 %vm1244_vm6, %v5507_v52 }
 0x4e8   : > { %3614 = vmatpush3.xpose.msk.msra.mxu1 %vm1244_vm6, %v1321_v54  ;;  %3615 = vmatprep.mubr.msk.f32.mxu1 %vm4727_vm5, %v4726_v47 }
 0x4e9   : > { %3623 = vmatprep.subr.mxu1 %v4726_v47 }
 0x4eb   : > { %3616 = vmatmul.mubr.msk.f32.vlgmr.msra.gmra.mrb[4].mxu1 %vm1244_vm6, %v5505_v50 }
 0x4ec   : > { %3625 = vmatprep.mubr.msk.f32.mxu1 %vm4727_vm5, %v4726_v47 }
 0x5ba   : > { %v1315_v55 = vpop.f32.mrb[2].mxu1 }
 0x5bb   : > { %v1396_v57 = vmul.f32 0.35355338, %v1315_v55  ;;  %v3612_v58 = vpop.f32.mrb[3].mxu1 }
 0x5bd   : > { %v1398_v59 = vadd.f32 %v1396_v57, %v5523_v56 }
 0x5be   : > { %v1392_v60 = vpop.f32.mrb[4].mxu1 }
 0x5bf   : > { %v1397_v61 = vmul.f32 0.35355338, %v1392_v60  ;;  %v3617_v62 = vpop.f32.mrb[5].mxu1  ;;  %v1400_v63 = vsel %vm1244_vm6, %v1398_v59, -inf }
 0x5c0   : > { %1401 = vmax.xlane.f32.xlu1 %v1400_v63 }
 0x5c1   : > { %v1399_v0 = vadd.f32 %v1397_v61, %v5523_v56 }
 0x5c3   : > { %v1403_v1 = vsel %vm1244_vm6, %v1399_v0, -inf }
 0x5c4   : > { %1404 = vmax.xlane.f32.xlu0 %v1403_v1 }
 0x5d1   : > { %1498 = vrot.lane.b32.xlu1 %v5505_v50, %s4729_s1 }
 0x5d5   : > { %1578 = vrot.lane.b32.xlu1 %v5507_v52, %s4730_s4 }
 0x5d9   : > { %1656 = vrot.lane.b32.xlu1 %v5505_v50, %s4730_s4  ;;  %s4740_s4 = smov 16  }
 0x5da   : > { %1422 = vrot.lane.b32.xlu0 %v5507_v52, %s4729_s1  ;;  %s4739_s1 = smov 8  }
 0x64d   : > { %v1402_v2 = vpop.xlane.xlu1 %1401 }
 0x64e   : > { %v1406_v3 = vsub.f32 %v1398_v59, %v1402_v2 }
 0x650   : > { %v1408_v4 = vmul.f32 1.442695, %v1406_v3 }
 0x651   : > { %v1499_v5 = vpop.permute.xlu1 %1498  ;;  %v1405_v6 = vpop.xlane.xlu0 %1404 }
 0x652   : > { %4018 = vpow2.f32 %v1408_v4  ;;  %v1407_v7 = vsub.f32 %v1399_v0, %v1405_v6  ;;  %3624 = vmatpush3.msra.mxu1 %v1499_v5 }
 0x653   : > { %3633 = vmatprep.subr.mxu1 %v4726_v47 }
 0x654   : > { %v1410_v8 = vmul.f32 1.442695, %v1407_v7 }
 0x655   : > { %v1423_v9 = vpop.permute.xlu0 %1422  ;;  %v1579_v16 = vpop.permute.xlu1 %1578 }
 0x656   : > { %4020 = vpow2.f32 %v1410_v8  ;;  %3619 = vmatpush3.msra.mxu0 %v1423_v9 }
 0x657   : > { %3628 = vmatprep.subr.mxu0 %v4726_v47 }
 0x659   : > { %v1657_v17 = vpop.permute.xlu1 %1656 }
 0x65c   : > { %v4019_v10 = vpop.eup %4018 }
 0x65d   : > { %v1412_v13 = vsel %vm1244_vm6, %v4019_v10, 0.0 }
 0x65e   : > { %1413 = vadd.xlane.f32.xlu0 %v1412_v13 }
 0x660   : > { %v4021_v14 = vpop.eup %4020 }
 0x661   : > { %v1415_v15 = vsel %vm1244_vm6, %v4021_v14, 0.0 }
 0x662   : > { %1416 = vadd.xlane.f32.xlu1 %v1415_v15 }
 0x673   : > { %1654 = vrot.lane.b32.xlu1 %v5505_v50, %s4731_s17 }
 0x674   : > { %1576 = vrot.lane.b32.xlu0 %v5507_v52, %s4731_s17  ;;  %s4741_s17 = smov 24  }
 0x6eb   : > { %v1414_v18 = vpop.xlane.xlu0 %1413 }
 0x6ec   : > { %4022 = vrcp.f32 %v1414_v18 }
 0x6ef   : > { %v1417_v19 = vpop.xlane.xlu1 %1416  ;;  %v1577_v24 = vpop.permute.xlu0 %1576 }
 0x6f0   : > { %4024 = vrcp.f32 %v1417_v19 }
 0x6f3   : > { %v1655_v25 = vpop.permute.xlu1 %1654 }
 0x6f6   : > { %v4023_v20 = vpop.eup %4022 }
 0x6f7   : > { %v1420_v21 = vmul.f32 %v4023_v20, %v4019_v10 }
 0x6f9   : > { %3621 = vmatmul.mubr.msk.f32.vlgmr.msra.gmra.mrb[0].mxu0 %vm1244_vm6, %v1420_v21 }
 0x6fa   : > { %v4025_v22 = vpop.eup %4024  ;;  %3629 = vmatpush3.xpose.msk.msra.mxu0 %vm1244_vm6, %v1579_v16  ;;  %3630 = vmatprep.mubr.msk.f32.mxu0 %vm4727_vm5, %v4726_v47 }
 0x6fb   : > { %v1421_v23 = vmul.f32 %v4025_v22, %v4021_v14  ;;  %3638 = vmatprep.subr.mxu0 %v4726_v47 }
 0x6fd   : > { %3626 = vmatmul.mubr.msk.f32.vlgmr.msra.gmra.mrb[6].mxu1 %vm1244_vm6, %v1421_v23  ;;  %3631 = vmatmul.mubr.msk.f32.vlgmr.msra.gmra.mrb[2].mxu0 %vm1244_vm6, %v1577_v24 }
 0x6fe   : > { %3634 = vmatpush3.xpose.msk.msra.mxu1 %vm1244_vm6, %v1657_v17  ;;  %3635 = vmatprep.mubr.msk.f32.mxu1 %vm4727_vm5, %v4726_v47 }
 0x6ff   : > { %3643 = vmatprep.subr.mxu1 %v4726_v47  ;;  %3640 = vmatprep.mubr.msk.f32.mxu0 %vm4727_vm5, %v4726_v47 }
 0x701   : > { %3636 = vmatmul.mubr.msk.f32.vlgmr.msra.gmra.mrb[8].mxu1 %vm1244_vm6, %v1655_v25 }
 0x702   : > { %3645 = vmatprep.mubr.msk.f32.mxu1 %vm4727_vm5, %v4726_v47 }
 0x7cc   : > { %v1494_v26 = vpop.f32.mrb[0].mxu0 }
 0x7cd   : > { %1574 = vst.msk [vmem:[#allocation4] sm:$0xff] %vm1244_vm6, %v1494_v26  ;;  %v3622_v27 = vpop.f32.mrb[1].mxu0 }
 0x7d0   : > { %v1570_v28 = vpop.f32.mrb[6].mxu1  ;;  %v1650_v29 = vpop.f32.mrb[2].mxu0 }
 0x7d1   : > { %1575 = vst.msk [vmem:[#allocation4 + $0x8] sm:$0xff] %vm1244_vm6, %v1570_v28  ;;  %v1732_v30 = vmul.f32 0.35355338, %v1650_v29  ;;  %v3627_v31 = vpop.f32.mrb[7].mxu1  ;;  %v3632_v32 = vpop.f32.mrb[3].mxu0 }
 0x7d3   : > { %v1734_v33 = vadd.f32 %v1732_v30, %v5523_v56 }
 0x7d4   : > { %v1728_v34 = vpop.f32.mrb[8].mxu1 }
 0x7d5   : > { %v1733_v35 = vmul.f32 0.35355338, %v1728_v34  ;;  %v3637_v36 = vpop.f32.mrb[9].mxu1  ;;  %v1736_v37 = vsel %vm1244_vm6, %v1734_v33, -inf }
 0x7d6   : > { %1737 = vmax.xlane.f32.xlu0 %v1736_v37 }
 0x7d7   : > { %v1735_v38 = vadd.f32 %v1733_v35, %v5523_v56 }
 0x7d9   : > { %v1739_v39 = vsel %vm1244_vm6, %v1735_v38, -inf }
 0x7da   : > { %1740 = vmax.xlane.f32.xlu1 %v1739_v39 }
 0x7eb   : > { %1834 = vrot.lane.b32.xlu1 %v5505_v50, %s4732_s24 }
 0x7ec   : > { %1758 = vrot.lane.b32.xlu0 %v5507_v52, %s4732_s24 }
 0x7ef   : > { %1923 = vrot.lane.b32.xlu1 %v5507_v52, %s4733_s15 }
 0x7f3   : > { %2001 = vrot.lane.b32.xlu1 %v5505_v50, %s4733_s15 }
 0x7f7   : > { %1999 = vrot.lane.b32.xlu1 %v5505_v50, %s4734_s22 }
 0x863   : > { %v1738_v40 = vpop.xlane.xlu0 %1737 }
 0x864   : > { %v1742_v41 = vsub.f32 %v1734_v33, %v1738_v40 }
 0x866   : > { %v1744_v42 = vmul.f32 1.442695, %v1742_v41 }
 0x867   : > { %v1759_v43 = vpop.permute.xlu0 %1758  ;;  %v1741_v44 = vpop.xlane.xlu1 %1740 }
 0x868   : > { %4026 = vpow2.f32 %v1744_v42  ;;  %v1743_v45 = vsub.f32 %v1735_v38, %v1741_v44  ;;  %3639 = vmatpush3.msra.mxu0 %v1759_v43 }
 0x869   : > { %3648 = vmatprep.subr.mxu0 %v4726_v47 }
 0x86a   : > { %v1746_v46 = vmul.f32 1.442695, %v1743_v45 }
 0x86b   : > { %v1835_v48 = vpop.permute.xlu1 %1834 }
 0x86c   : > { %4028 = vpow2.f32 %v1746_v46  ;;  %3644 = vmatpush3.msra.mxu1 %v1835_v48 }
 0x86d   : > { %3653 = vmatprep.subr.mxu1 %v4726_v47 }
 0x86f   : > { %v1924_v58 = vpop.permute.xlu1 %1923 }
 0x872   : > { %v4027_v49 = vpop.eup %4026 }
 0x873   : > { %v1748_v51 = vsel %vm1244_vm6, %v4027_v49, 0.0  ;;  %v2002_v62 = vpop.permute.xlu1 %2001 }
 0x874   : > { %1749 = vadd.xlane.f32.xlu0 %v1748_v51 }
 0x876   : > { %v4029_v53 = vpop.eup %4028 }
 0x877   : > { %v1751_v54 = vsel %vm1244_vm6, %v4029_v53, 0.0  ;;  %v2000_v1 = vpop.permute.xlu1 %1999 }
 0x878   : > { %1752 = vadd.xlane.f32.xlu0 %v1751_v54 }
 0x88e   : > { %1921 = vrot.lane.b32.xlu0 %v5507_v52, %s4734_s22 }
 0x901   : > { %v1750_v55 = vpop.xlane.xlu0 %1749 }
 0x902   : > { %4030 = vrcp.f32 %v1750_v55 }
 0x905   : > { %v1753_v57 = vpop.xlane.xlu0 %1752 }
 0x906   : > { %4032 = vrcp.f32 %v1753_v57 }
 0x909   : > { %v1922_v0 = vpop.permute.xlu0 %1921 }
 0x90c   : > { %v4031_v59 = vpop.eup %4030 }
 0x90d   : > { %v1756_v60 = vmul.f32 %v4031_v59, %v4027_v49 }
 0x90f   : > { %3641 = vmatmul.mubr.msk.f32.vlgmr.msra.gmra.mrb[4].mxu0 %vm1244_vm6, %v1756_v60 }
 0x910   : > { %v4033_v61 = vpop.eup %4032  ;;  %3649 = vmatpush3.xpose.msk.msra.mxu0 %vm1244_vm6, %v1924_v58  ;;  %3650 = vmatprep.mubr.msk.f32.mxu0 %vm4727_vm5, %v4726_v47 }
 0x911   : > { %v1757_v63 = vmul.f32 %v4033_v61, %v4029_v53  ;;  %3658 = vmatprep.subr.mxu0 %v4726_v47 }
 0x913   : > { %3646 = vmatmul.mubr.msk.f32.vlgmr.msra.gmra.mrb[10].mxu1 %vm1244_vm6, %v1757_v63  ;;  %3651 = vmatmul.mubr.msk.f32.vlgmr.msra.gmra.mrb[6].mxu0 %vm1244_vm6, %v1922_v0 }
 0x914   : > { %3654 = vmatpush3.xpose.msk.msra.mxu1 %vm1244_vm6, %v2002_v62  ;;  %3655 = vmatprep.mubr.msk.f32.mxu1 %vm4727_vm5, %v4726_v47 }
 0x915   : > { %3663 = vmatprep.subr.mxu1 %v4726_v47  ;;  %3660 = vmatprep.mubr.msk.f32.mxu0 %vm4727_vm5, %v4726_v47 }
 0x917   : > { %3656 = vmatmul.mubr.msk.f32.vlgmr.msra.gmra.mrb[12].mxu1 %vm1244_vm6, %v2000_v1 }
 0x918   : > { %3665 = vmatprep.mubr.msk.f32.mxu1 %vm4727_vm5, %v4726_v47 }
 0x9e2   : > { %v5587_v2 = vpop.f32.mrb[4].mxu0 }
 0x9e3   : > { %v3642_v3 = vpop.f32.mrb[5].mxu0 }
 0x9e6   : > { %v5589_v4 = vpop.f32.mrb[10].mxu1  ;;  %v1995_v5 = vpop.f32.mrb[6].mxu0 }
 0x9e7   : > { %v2077_v6 = vmul.f32 0.35355338, %v1995_v5  ;;  %v3647_v7 = vpop.f32.mrb[11].mxu1  ;;  %v3652_v8 = vpop.f32.mrb[7].mxu0 }
 0x9e9   : > { %v2079_v9 = vadd.f32 %v2077_v6, %v5523_v56 }
 0x9ea   : > { %v2073_v10 = vpop.f32.mrb[12].mxu1 }
 0x9eb   : > { %v2078_v13 = vmul.f32 0.35355338, %v2073_v10  ;;  %v3657_v14 = vpop.f32.mrb[13].mxu1  ;;  %v2081_v15 = vsel %vm1244_vm6, %v2079_v9, -inf }
 0x9ec   : > { %2082 = vmax.xlane.f32.xlu0 %v2081_v15  ;;  %v2613_v14 = vld [vmem:[%s5452_s2] sm:$0xff]  ;;  %v2614_v15 = vld [vmem:[%s5452_s2 + $0x8] sm:$0xff] }
 0x9ed   : > { %v2080_v16 = vadd.f32 %v2078_v13, %v5523_v56 }
 0x9ef   : > { %v2084_v17 = vsel %vm1244_vm6, %v2080_v16, -inf }
 0x9f0   : > { %2085 = vmax.xlane.f32.xlu1 %v2084_v17  ;;  %v2615_v17 = vld [vmem:[%s5452_s2 + $0x10] sm:$0xff] }
 0xa01   : > { %2179 = vrot.lane.b32.xlu1 %v5505_v50, %s4735_s8 }
 0xa02   : > { %2103 = vrot.lane.b32.xlu0 %v5507_v52, %s4735_s8 }
 0xa05   : > { %2268 = vrot.lane.b32.xlu1 %v5507_v52, %s4736_s6 }
 0xa09   : > { %2346 = vrot.lane.b32.xlu1 %v5505_v50, %s4736_s6 }
 0xa0d   : > { %2344 = vrot.lane.b32.xlu1 %v5505_v50, %s4737_s14 }
 0xa79   : > { %v2083_v18 = vpop.xlane.xlu0 %2082 }
 0xa7a   : > { %v2087_v19 = vsub.f32 %v2079_v9, %v2083_v18  ;;  %v2616_v18 = vld [vmem:[%s5452_s2 + $0x18] sm:$0xff]  ;;  %s5882_s2 = sld [smem:[#allocation38_spill]] }
 0xa7c   : > { %v2089_v20 = vmul.f32 1.442695, %v2087_v19  ;;  %v3768_v19 = vpack.c.bf16 %v2616_v18, %v2615_v17  ;;  %v2869_v17 = vld [vmem:[%s5460_s9 + $0x40] sm:$0xff]  ;;  %v2870_v18 = vld [vmem:[%s5460_s9 + $0x48] sm:$0xff] }
 0xa7d   : > { %v2104_v21 = vpop.permute.xlu0 %2103  ;;  %v2086_v22 = vpop.xlane.xlu1 %2085 }
 0xa7e   : > { %4034 = vpow2.f32 %v2089_v20  ;;  %v2088_v23 = vsub.f32 %v2080_v16, %v2086_v22  ;;  %3659 = vmatpush3.msra.mxu0 %v2104_v21  ;;  %v3764_v16 = vpack.c.bf16 %v2614_v15, %v2613_v14  ;;  %v2867_v14 = vld [vmem:[%s5460_s9 + $0x30] sm:$0xff]  ;;  %v2868_v15 = vld [vmem:[%s5460_s9 + $0x38] sm:$0xff] }
 0xa7f   : > { %3668 = vmatprep.subr.mxu0 %v4726_v47 }
 0xa80   : > { %v2091_v24 = vmul.f32 1.442695, %v2088_v23  ;;  %p3510_p6 = scmp.ne.s32.totalorder %s5882_s2, 2 }
 0xa81   : > { %v2180_v25 = vpop.permute.xlu1 %2179  ;;  %vm2979_vm10 = vcmask (!%p3510_p6), 1040384   ;;  %vm2983_vm11 = vcmask (!%p3510_p6), 254976   ;;  %vm4743_vm12 = vmmov (!%p3510_p6), 0   ;;  %vm3088_vm13 = vcmask (!%p3510_p6), 123904  }
 0xa82   : > { %4036 = vpow2.f32 %v2091_v24  ;;  %3664 = vmatpush3.msra.mxu1 %v2180_v25 }
 0xa83   : > { %3673 = vmatprep.subr.mxu1 %v4726_v47 }
 0xa85   : > { %v2269_v32 = vpop.permute.xlu1 %2268 }
 0xa88   : > { %v4035_v26 = vpop.eup %4034 }
 0xa89   : > { %v2093_v27 = vsel %vm1244_vm6, %v4035_v26, 0.0  ;;  %v2347_v36 = vpop.permute.xlu1 %2346 }
 0xa8a   : > { %2094 = vadd.xlane.f32.xlu0 %v2093_v27 }
 0xa8c   : > { %v4037_v28 = vpop.eup %4036 }
 0xa8d   : > { %v2096_v29 = vsel %vm1244_vm6, %v4037_v28, 0.0  ;;  %v2345_v39 = vpop.permute.xlu1 %2344 }
 0xa8e   : > { %2097 = vadd.xlane.f32.xlu0 %v2096_v29  ;;  %v3501_v29 = vld [vmem:[%s907_s0] ss:$0 sm:$0xff]  ;;  %s2968_s0 = sld [smem:[#allocation6]] (!%p3510_p6) }
 0xaa4   : > { %2266 = vrot.lane.b32.xlu0 %v5507_v52, %s4737_s14 }
 0xb17   : > { %v2095_v30 = vpop.xlane.xlu0 %2094 }
 0xb18   : > { %4038 = vrcp.f32 %v2095_v30 }
 0xb1b   : > { %v2098_v31 = vpop.xlane.xlu0 %2097 }
 0xb1c   : > { %4040 = vrcp.f32 %v2098_v31 }
 0xb1f   : > { %v2267_v38 = vpop.permute.xlu0 %2266 }
 0xb22   : > { %v4039_v33 = vpop.eup %4038 }
 0xb23   : > { %v2101_v34 = vmul.f32 %v4039_v33, %v4035_v26 }
 0xb25   : > { %3661 = vmatmul.mubr.msk.f32.vlgmr.msra.gmra.mrb[8].mxu0 %vm1244_vm6, %v2101_v34 }
 0xb26   : > { %v4041_v35 = vpop.eup %4040  ;;  %3669 = vmatpush3.xpose.msk.msra.mxu0 %vm1244_vm6, %v2269_v32  ;;  %3670 = vmatprep.mubr.msk.f32.mxu0 %vm4727_vm5, %v4726_v47 }
 0xb27   : > { %v2102_v37 = vmul.f32 %v4041_v35, %v4037_v28  ;;  %3678 = vmatprep.subr.mxu0 %v4726_v47 }
 0xb29   : > { %3666 = vmatmul.mubr.msk.f32.vlgmr.msra.gmra.mrb[14].mxu1 %vm1244_vm6, %v2102_v37  ;;  %3671 = vmatmul.mubr.msk.f32.vlgmr.msra.gmra.mrb[10].mxu0 %vm1244_vm6, %v2267_v38 }
 0xb2a   : > { %3674 = vmatpush3.xpose.msk.msra.mxu1 %vm1244_vm6, %v2347_v36  ;;  %3675 = vmatprep.mubr.msk.f32.mxu1 %vm4727_vm5, %v4726_v47 }
 0xb2b   : > { %3683 = vmatprep.subr.mxu1 %v4726_v47  ;;  %3680 = vmatprep.mubr.msk.f32.mxu0 %vm4727_vm5, %v4726_v47 }
 0xb2d   : > { %3676 = vmatmul.mubr.msk.f32.vlgmr.msra.gmra.mrb[16].mxu1 %vm1244_vm6, %v2345_v39 }
 0xb2e   : > { %3685 = vmatprep.mubr.msk.f32.mxu1 %vm4727_vm5, %v4726_v47 }
 0xbf8   : > { %v2175_v40 = vpop.f32.mrb[8].mxu0 }
 0xbf9   : > { %v3662_v41 = vpop.f32.mrb[9].mxu0 }
 0xbfc   : > { %v2251_v42 = vpop.f32.mrb[14].mxu1  ;;  %v2340_v43 = vpop.f32.mrb[10].mxu0 }
 0xbfd   : > { %v2422_v44 = vmul.f32 0.35355338, %v2340_v43  ;;  %v3667_v45 = vpop.f32.mrb[15].mxu1  ;;  %v3672_v46 = vpop.f32.mrb[11].mxu0 }
 0xbfe   : > { %v2753_v45 = vld [vmem:[%s5457_s26] sm:$0xff]  ;;  %v2754_v46 = vld [vmem:[%s5457_s26 + $0x8] sm:$0xff] }
 0xbff   : > { %v2424_v48 = vadd.f32 %v2422_v44, %v5523_v56 }
 0xc00   : > { %v2418_v49 = vpop.f32.mrb[16].mxu1 }
 0xc01   : > { %v2423_v51 = vmul.f32 0.35355338, %v2418_v49  ;;  %v3677_v53 = vpop.f32.mrb[17].mxu1  ;;  %v2426_v54 = vsel %vm1244_vm6, %v2424_v48, -inf  ;;  %v2755_v49 = vld [vmem:[%s5457_s26 + $0x10] sm:$0xff] }
 0xc02   : > { %2427 = vmax.xlane.f32.xlu0 %v2426_v54 }
 0xc03   : > { %v2425_v55 = vadd.f32 %v2423_v51, %v5523_v56  ;;  %v2756_v51 = vld [vmem:[%s5457_s26 + $0x18] sm:$0xff] }
 0xc04   : > { %v3776_v53 = vpack.c.bf16 %v2756_v51, %v2755_v49 }
 0xc05   : > { %v2429_v57 = vsel %vm1244_vm6, %v2425_v55, -inf }
 0xc06   : > { %2430 = vmax.xlane.f32.xlu1 %v2429_v57 }
 0xc17   : > { %2524 = vrot.lane.b32.xlu1 %v5505_v50, %s4738_s5 }
 0xc1b   : > { %1912 = vrot.lane.b32.xlu1 %v5587_v2, %s4739_s1 }
 0xc1f   : > { %1914 = vrot.lane.b32.xlu1 %v5589_v4, %s4739_s1 }
 0xc23   : > { %2259 = vrot.lane.b32.xlu1 %v2251_v42, %s4740_s4 }
 0xc8f   : > { %v2428_v47 = vpop.xlane.xlu0 %2427 }
 0xc90   : > { %v2432_v58 = vsub.f32 %v2424_v48, %v2428_v47  ;;  %v3772_v48 = vpack.c.bf16 %v2754_v46, %v2753_v45  ;;  %v3509_v46 = vld [vmem:[%s957_s3] ss:$0 sm:$0xff] }
 0xc92   : > { %v2434_v59 = vmul.f32 1.442695, %v2432_v58 }
 0xc93   : > { %v2431_v60 = vpop.xlane.xlu1 %2430 }
 0xc94   : > { %4042 = vpow2.f32 %v2434_v59  ;;  %v2433_v56 = vsub.f32 %v2425_v55, %v2431_v60 }
 0xc96   : > { %v2436_v61 = vmul.f32 1.442695, %v2433_v56  ;;  %v3502_v56 = vld [vmem:[%s915_s16] ss:$0 sm:$0xff]  ;;  %s3511_s16 = sld [smem:[#allocation6 + $0x1]] (!%p3510_p6) }
 0xc97   : > { %v2525_v62 = vpop.permute.xlu1 %2524 }
 0xc98   : > { %4044 = vpow2.f32 %v2436_v61  ;;  %3684 = vmatpush3.msra.mxu1 %v2525_v62  ;;  %v3503_v62 = vld [vmem:[%s923_s7] ss:$0 sm:$0xff]  ;;  %s2969_s7 = scalar_lea.vmem (!%p3510_p6), [#allocation2], %s2968_s0 }
 0xc99   : > { %3765 = vmatprep.subr.bf16.mxu1 %v3764_v16 }
 0xc9b   : > { %v1913_v63 = vpop.permute.xlu1 %1912 }
 0xc9c   : > { %1919 = vst.msk [vmem:[#allocation4] sm:$0xff] %vm1918_vm7, %v1913_v63  ;;  %s3242_s13 = scalar_lea.vmem (!%p3510_p6), [#allocation2], %s3511_s16 }
 0xc9e   : > { %v4043_v50 = vpop.eup %4042 }
 0xc9f   : > { %v1915_v0 = vpop.permute.xlu1 %1914  ;;  %v2438_v1 = vsel %vm1244_vm6, %v4043_v50, 0.0 }
 0xca0   : > { %1920 = vst.msk [vmem:[#allocation4 + $0x8] sm:$0xff] %vm1918_vm7, %v1915_v0  ;;  %2439 = vadd.xlane.f32.xlu0 %v2438_v1 }
 0xca2   : > { %v4045_v2 = vpop.eup %4044 }
 0xca3   : > { %v2260_v3 = vpop.permute.xlu1 %2259  ;;  %v2441_v4 = vsel %vm1244_vm6, %v4045_v2, 0.0 }
 0xca4   : > { %2265 = vst.msk [vmem:[#allocation4 + $0x8] sm:$0xff] %vm2263_vm8, %v2260_v3  ;;  %2442 = vadd.xlane.f32.xlu0 %v2441_v4  ;;  %v2861_v4 = vld [vmem:[%s5460_s9] sm:$0xff] }
 0xcba   : > { %2448 = vrot.lane.b32.xlu0 %v5507_v52, %s4738_s5 }
 0xcbe   : > { %2257 = vrot.lane.b32.xlu0 %v2175_v40, %s4740_s4 }
 0xd2d   : > { %v2440_v5 = vpop.xlane.xlu0 %2439 }
 0xd2e   : > { %4046 = vrcp.f32 %v2440_v5  ;;  %v2862_v5 = vld [vmem:[%s5460_s9 + $0x8] sm:$0xff] }
 0xd31   : > { %v2443_v6 = vpop.xlane.xlu0 %2442 }
 0xd32   : > { %4048 = vrcp.f32 %v2443_v6  ;;  %v3780_v6 = vpack.c.bf16 %v2862_v5, %v2861_v4  ;;  %v4744_v4 = vmov (!%p3510_p6), 0.0  }
 0xd35   : > { %v2449_v7 = vpop.permute.xlu0 %2448 }
 0xd36   : > { %3679 = vmatpush3.msra.mxu0 %v2449_v7  ;;  %v2863_v7 = vld [vmem:[%s5460_s9 + $0x10] sm:$0xff] }
 0xd37   : > { %3781 = vmatprep.subr.bf16.mxu0 %v3780_v6 }
 0xd38   : > { %v4047_v8 = vpop.eup %4046 }
 0xd39   : > { %v2446_v9 = vmul.f32 %v4047_v8, %v4043_v50  ;;  %v2258_v10 = vpop.permute.xlu0 %2257  ;;  %v2864_v8 = vld [vmem:[%s5460_s9 + $0x18] sm:$0xff] }
 0xd3a   : > { %2264 = vst.msk [vmem:[#allocation4] sm:$0xff] %vm2263_vm8, %v2258_v10  ;;  %v2865_v10 = vld [vmem:[%s5460_s9 + $0x20] sm:$0xff] }
 0xd3b   : > { %3681 = vmatmul.mubr.msk.f32.vlgmr.msra.gmra.mrb[12].mxu0 %vm1244_vm6, %v2446_v9  ;;  %v3784_v9 = vpack.c.bf16 %v2864_v8, %v2863_v7 }
 0xd3c   : > { %v4049_v13 = vpop.eup %4048  ;;  %3783 = vmatpush3.bf16.msra.mxu0 %v3780_v6 }
 0xd3d   : > { %v2447_v52 = vmul.f32 %v4049_v13, %v4045_v2  ;;  %3785 = vmatprep.subr.bf16.mxu0 %v3784_v9  ;;  %v2866_v13 = vld [vmem:[%s5460_s9 + $0x28] sm:$0xff] }
 0xd3f   : > { %3686 = vmatmul.mubr.msk.f32.vlgmr.msra.gmra.mrb[18].mxu1 %vm1244_vm6, %v2447_v52  ;;  %v3788_v52 = vpack.c.bf16 %v2866_v13, %v2865_v10  ;;  %v3513_v10 = vld [vmem:[#allocation25] ss:$0 sm:$0xff] (!%p3510_p6) }
 0xd40   : > { %3767 = vmatpush3.bf16.msra.mxu1 %v3764_v16  ;;  %3787 = vmatpush3.bf16.msra.mxu0 %v3784_v9  ;;  %v3792_v16 = vpack.c.bf16 %v2868_v15, %v2867_v14 }
 0xd41   : > { %3769 = vmatprep.subr.bf16.mxu1 %v3768_v19  ;;  %3789 = vmatprep.subr.bf16.mxu0 %v3788_v52 }
 0xd44   : > { %3771 = vmatpush3.bf16.msra.mxu1 %v3768_v19  ;;  %3791 = vmatpush3.bf16.msra.mxu0 %v3788_v52  ;;  %v3796_v19 = vpack.c.bf16 %v2870_v18, %v2869_v17  ;;  %v3514_v52 = vld [vmem:[#allocation26] ss:$0 sm:$0xff] (!%p3510_p6) }
 0xd45   : > { %3773 = vmatprep.subr.bf16.mxu1 %v3772_v48  ;;  %3793 = vmatprep.subr.bf16.mxu0 %v3792_v16 }
 0xd48   : > { %3795 = vmatpush3.bf16.msra.mxu0 %v3792_v16 }
 0xd49   : > { %3797 = vmatprep.subr.bf16.mxu0 %v3796_v19 }
 0xd4c   : > { %3799 = vmatpush3.bf16.msra.mxu0 %v3796_v19 }
 0xe0e   : > { %v2520_v20 = vpop.f32.mrb[12].mxu0 }
 0xe0f   : > { %2602 = vrot.lane.b32.xlu0 %v2520_v20, %s4741_s17  ;;  %v3682_v21 = vpop.f32.mrb[13].mxu0  ;;  %v2871_v20 = vld [vmem:[%s5460_s9 + $0x50] sm:$0xff] }
 0xe10   : > { %v2872_v21 = vld [vmem:[%s5460_s9 + $0x58] sm:$0xff] }
 0xe12   : > { %v2596_v22 = vpop.f32.mrb[18].mxu1 }
 0xe13   : > { %2604 = vrot.lane.b32.xlu1 %v2596_v22, %s4741_s17  ;;  %v3687_v23 = vpop.f32.mrb[19].mxu1  ;;  %v3800_v22 = vpack.c.bf16 %v2872_v21, %v2871_v20 }
 0xe14   : > { %v2873_v23 = vld [vmem:[%s5460_s9 + $0x60] sm:$0xff] }
 0xe15   : > { %3801 = vmatprep.subr.bf16.mxu0 %v3800_v22 }
 0xe16   : > { %3803 = vmatpush3.bf16.msra.mxu0 %v3800_v22 }
 0xe81   : > { %v2603_v24 = vpop.permute.xlu0 %2602 }
 0xe82   : > { %2609 = vst.msk [vmem:[#allocation4] sm:$0xff] %vm2608_vm9, %v2603_v24  ;;  %v2874_v24 = vld [vmem:[%s5460_s9 + $0x68] sm:$0xff] }
 0xe85   : > { %v2605_v25 = vpop.permute.xlu1 %2604 }
 0xe86   : > { %2610 = vst.msk [vmem:[#allocation4 + $0x8] sm:$0xff] %vm2608_vm9, %v2605_v25  ;;  %v3804_v25 = vpack.c.bf16 %v2874_v24, %v2873_v23 }
 0xe88   : > { %3805 = vmatprep.subr.bf16.mxu0 %v3804_v25 }
 0xe89   : > { %v2611_v26 = vld [vmem:[#allocation4] sm:$0xff]  ;;  %3807 = vmatpush3.bf16.msra.mxu0 %v3804_v25 }
 0xe8a   : > { %3696 = vmatprep.mubr.msk.f32.mxu1 %vm1104_vm4, %v2611_v26  ;;  %v2875_v26 = vld [vmem:[%s5460_s9 + $0x70] sm:$0xff] }
 0xe8d   : > { %v2612_v27 = vld [vmem:[#allocation4 + $0x8] sm:$0xff] }
 0xe8e   : > { %3697 = vmatmul.mubr.msk.f32.vlgmr.msra.gmra.mrb[20].mxu1 %vm1104_vm4, %v2612_v27  ;;  %v2876_v27 = vld [vmem:[%s5460_s9 + $0x78] sm:$0xff] }
 0xe8f   : > { %3775 = vmatpush3.bf16.msra.mxu1 %v3772_v48 }
 0xe90   : > { %3777 = vmatprep.subr.bf16.mxu1 %v3776_v53 }
 0xe93   : > { %3779 = vmatpush3.bf16.msra.mxu1 %v3776_v53 }
 0xf61   : > { %v3698_v28 = vpop.f32.mrb[20].mxu1 }
 0xf62   : > { %v2699_v30 = vadd.f32 %v3698_v28, %v5477_v12  ;;  %v2689_v31 = vpop.f32.mrb[21].mxu1  ;;  %v3808_v28 = vpack.c.bf16 %v2876_v27, %v2875_v26 }
 0xf63   : > { %v2698_v32 = vadd.f32 %v2689_v31, %v5475_v11 }
 0xf64   : > { %v5647_v33 = vadd.f32 %v3501_v29, %v2699_v30  ;;  %3809 = vmatprep.subr.bf16.mxu0 %v3808_v28 }
 0xf65   : > { %v5649_v34 = vadd.f32 %v3501_v29, %v2698_v32  ;;  %3811 = vmatpush3.bf16.msra.mxu0 %v3808_v28  ;;  %v3504_v29 = vld [vmem:[%s940_s23] ss:$0 sm:$0xff] }
 0xf66   : > { %v2714_v35 = vsel %vm1104_vm4, %v5647_v33, 0.0 }
 0xf67   : > { %2715 = vadd.xlane.f32.xlu1 %v2714_v35  ;;  %v2711_v36 = vsel %vm1104_vm4, %v5649_v34, 0.0 }
 0xf68   : > { %2712 = vadd.xlane.f32.xlu0 %v2711_v36 }
 0xff4   : > { %v2716_v37 = vpop.xlane.xlu1 %2715 }
 0xff5   : > { %v2718_v38 = vmul.f32 0.03125, %v2716_v37  ;;  %v2713_v12 = vpop.xlane.xlu0 %2712 }
 0xff6   : > { %v2717_v11 = vmul.f32 0.03125, %v2713_v12 }
 0xff7   : > { %v2720_v39 = vsub.f32 %v5647_v33, %v2718_v38 }
 0xff8   : > { %v2719_v40 = vsub.f32 %v5649_v34, %v2717_v11 }
 0xff9   : > { %v2722_v43 = vmul.f32 %v2720_v39, %v2720_v39 }
 0xffa   : > { %v2721_v41 = vmul.f32 %v2719_v40, %v2719_v40 }
 0xffb   : > { %v2726_v44 = vsel %vm1104_vm4, %v2722_v43, 0.0 }
 0xffc   : > { %v2723_v42 = vsel %vm1104_vm4, %v2721_v41, 0.0 }
 0xffd   : > { %2724 = vadd.xlane.f32.xlu0 %v2723_v42 }
0x1001   : > { %2727 = vadd.xlane.f32.xlu0 %v2726_v44 }
0x108a   : > { %v2725_v54 = vpop.xlane.xlu0 %2724 }
0x108b   : > { %v2729_v55 = vmul.f32 0.03125, %v2725_v54 }
0x108d   : > { %v2731_v57 = vadd.f32 1e-05, %v2729_v55 }
0x108e   : > { %v2728_v47 = vpop.xlane.xlu0 %2727 }
0x108f   : > { %4050 = vrsqrt.f32 %v2731_v57  ;;  %v2730_v58 = vmul.f32 0.03125, %v2728_v47 }
0x1091   : > { %v2732_v59 = vadd.f32 1e-05, %v2730_v58 }
0x1093   : > { %4052 = vrsqrt.f32 %v2732_v59 }
0x1099   : > { %v4051_v60 = vpop.eup %4050 }
0x109a   : > { %v2735_v61 = vmul.f32 %v4051_v60, %v2719_v40 }
0x109c   : > { %v2743_v63 = vmul.f32 %v3502_v56, %v2735_v61 }
0x109d   : > { %v4053_v50 = vpop.eup %4052 }
0x109e   : > { %v2736_v0 = vmul.f32 %v4053_v50, %v2720_v39  ;;  %v2751_v1 = vadd.f32 %v3503_v62, %v2743_v63  ;;  %v3011_v63 = vld [vmem:[#allocation28] sm:$0xff] (!%p3510_p6)  ;;  %v3012_v50 = vld [vmem:[#allocation28 + $0x8] sm:$0xff] (!%p3510_p6) }
0x10a0   : > { %v2744_v2 = vmul.f32 %v3502_v56, %v2736_v0  ;;  %3707 = vmatprep.mubr.msk.f32.mxu1 %vm1104_vm4, %v2751_v1  ;;  %v3013_v0 = vld [vmem:[#allocation28 + $0x10] sm:$0xff] (!%p3510_p6)  ;;  %v4742_v1 = vmov (!%p3510_p6), 0.0|0.0  }
0x10a1   : > { %3812 = vmatprep.subr.bf16.mxu0 (!%p3510_p6), %v4742_v1 }
0x10a2   : > { %v2752_v3 = vadd.f32 %v3503_v62, %v2744_v2  ;;  %v3813_v2 = vpack.c.bf16 (!%p3510_p6), %v3012_v50, %v3011_v63 }
0x10a4   : > { %3708 = vmatmul.mubr.msk.f32.vlgmr.msra.gmra.mrb[22].mxu1 %vm1104_vm4, %v2752_v3  ;;  %v3014_v3 = vld [vmem:[#allocation28 + $0x18] sm:$0xff] (!%p3510_p6) }
0x10a5   : > { %v3816_v5 = vpack.c.bf16 (!%p3510_p6), %v3014_v3, %v3013_v0 }
0x1177   : > { %v3709_v30 = vpop.f32.mrb[22].mxu1 }
0x1178   : > { %v2842_v31 = vadd.f32 %v3709_v30, %v3504_v29  ;;  %v2836_v32 = vpop.f32.mrb[23].mxu1 }
0x1179   : > { %v2837_v35 = vadd.f32 %v3504_v29, %v2836_v32 }
0x117a   : > { %v3508_v36 = vmul.f32 -1.702, %v2842_v31 }
0x117b   : > { %v3507_v37 = vmul.f32 -1.702, %v2837_v35 }
0x117c   : > { %v2851_v38 = vmul.f32 1.442695, %v3508_v36 }
0x117d   : > { %v2849_v12 = vmul.f32 1.442695, %v3507_v37 }
0x117e   : > { %4054 = vpow2.f32 %v2851_v38 }
0x117f   : > { %4056 = vpow2.f32 %v2849_v12 }
0x1188   : > { %v4055_v11 = vpop.eup %4054 }
0x1189   : > { %v4057_v39 = vpop.eup %4056  ;;  %v2854_v40 = vadd.f32 1.0, %v4055_v11 }
0x118a   : > { %v2853_v41 = vadd.f32 1.0, %v4057_v39 }
0x118b   : > { %4058 = vrcp.f32 %v2854_v40 }
0x118c   : > { %4060 = vrcp.f32 %v2853_v41 }
0x1195   : > { %v4059_v42 = vpop.eup %4058 }
0x1196   : > { %v4061_v43 = vpop.eup %4060  ;;  %v2860_v45 = vmul.f32 %v4059_v42, %v2842_v31 }
0x1197   : > { %v2859_v44 = vmul.f32 %v4061_v43, %v2837_v35 }
0x1199   : > { %3742 = vmatprep.mubr.f32.mxu0 %v2859_v44 }
0x119a   : > { %3743 = vmatmul.mubr.f32.vlgmr.msra.gmra.mrb[14].mxu0 %v2860_v45 }
0x119b   : > { %3753 = vmatprep.mubr.msk.f32.mxu0 (!%p3510_p6), %vm4743_vm12, %v4744_v4  ;;  %3814 = vmatpush3.bf16.msra.mxu0 (!%p3510_p6), %v3813_v2 }
0x119c   : > { %3815 = vmatprep.subr.bf16.mxu0 (!%p3510_p6), %v4742_v1 }
0x119f   : > { %3817 = vmatpush3.bf16.msra.mxu0 (!%p3510_p6), %v3816_v5 }
0x126d   : > { %v3744_v48 = vpop.f32.mrb[14].mxu0  ;;  %2966 = sbr.rel (%p3510_p6) target bundleno = 5260 (0x148c), region = 176 }
0x126e   : > { %v2956_v49 = vadd.f32 %v3744_v48, %v3509_v46  ;;  %v2950_v51 = vpop.f32.mrb[15].mxu0 }
0x126f   : > { %v2951_v53 = vadd.f32 %v3509_v46, %v2950_v51 }
0x1270   : > { %v2960_v54 = vadd.f32 %v2956_v49, %v5647_v33 }
0x1271   : > { %v2959_v55 = vadd.f32 %v2951_v53, %v5649_v34 }
0x1272   : > { %2962 = vst.msk [vmem:[#allocation2 + $0x8] sm:$0xff] %vm1104_vm4, %v2960_v54 }
0x1273   : > { %2961 = vst.msk [vmem:[#allocation2] sm:$0xff] %vm1104_vm4, %v2959_v55 }
0x127a   : > { %v2970_v57 = vld [vmem:[%s2969_s7] sm:$0x1]  ;;  %v3512_v47 = vld [vmem:[%s3242_s13 + $0x8] sm:$0x1] }
0x127b   : > { %v2977_v58 = vrot.slane %v3512_v47, 7 }
0x127d   : > { %v2980_v59 = vsel %vm2979_vm10, %v2970_v57, %v2977_v58 }
0x127e   : > { %v2984_v33 = vsel %vm2983_vm11, %v2980_v59, 0.0 }
0x127f   : > { %2985 = vadd.xlane.f32.xlu0 %v2984_v33 }
0x130c   : > { %v2986_v34 = vpop.xlane.xlu0 %2985 }
0x130d   : > { %v2987_v60 = vmul.f32 0.03125, %v2986_v34 }
0x130f   : > { %v2988_v56 = vsub.f32 %v2980_v59, %v2987_v60 }
0x1311   : > { %v2989_v61 = vmul.f32 %v2988_v56, %v2988_v56 }
0x1313   : > { %v2990_v62 = vsel %vm2983_vm11, %v2989_v61, 0.0 }
0x1314   : > { %2991 = vadd.xlane.f32.xlu0 %v2990_v62 }
0x13a1   : > { %v2992_v6 = vpop.xlane.xlu0 %2991 }
0x13a2   : > { %v2993_v7 = vmul.f32 0.03125, %v2992_v6 }
0x13a4   : > { %v2994_v8 = vadd.f32 1e-05, %v2993_v7 }
0x13a6   : > { %4062 = vrsqrt.f32 %v2994_v8 }
0x13b0   : > { %v4063_v9 = vpop.eup %4062 }
0x13b1   : > { %v2996_v13 = vmul.f32 %v4063_v9, %v2988_v56 }
0x13b3   : > { %v3003_v14 = vmul.f32 %v3513_v10, %v2996_v13 }
0x13b5   : > { %v3010_v15 = vadd.f32 %v3514_v52, %v3003_v14 }
0x13b7   : > { %3754 = vmatmul.mubr.msk.f32.vlgmr.msra.gmra.mrb[0].mxu0 %vm1104_vm4, %v3010_v15 }
0x148a   : > { %v3084_v16 = vpop.f32.mrb[0].mxu0 }
0x148b   : > { %3089 = vst.msk [vmem:[#allocation29] sm:$0x3] %vm3088_vm13, %v3084_v16  ;;  %v3755_v17 = vpop.f32.mrb[1].mxu0 }
0x148c PF: > { %s5883_s26 = sld [smem:[#allocation39_spill]]  ;;  %s4745_s23 = smov [#allocation29]  }
0x148d   : > { %s3099_s9 = sshll.u32 %s4745_s23, 4  ;;  %s3100_s9 = int_to_ptr.vmem [resolvable:$true] %s3099_s9 }
0x148e   : > { %s4604_s3 = scalar_lea.vmem %s3100_s9, 32  ;;  %p4611_p2 = scmp.lt.s32.totalorder %s3100_s9, %s3100_s9 }
0x148f   : > { %p4605_p4 = scmp.ne.s32.totalorder %s3100_s9, %s4604_s3  ;;  %p4612_p11 = scmp.lt.s32.totalorder %s4604_s3, %s4604_s3 }
0x1491   : > { %p4613_p8 = por %p4612_p11, %p4611_p2 }
0x1492   : > { %p3935_p13 = scmp.eq.s32.totalorder %s5883_s26, 2 }
0x1494   : > { %p4606_p0 = pnand %p4605_p4, %p3935_p13 }
0x1496   : > { %p4607_p3 = pneg %p4606_p0 }
0x1498   : > { %p4614_p10 = pnand %p4613_p8, %p4607_p3 }
0x149a   : > { %4617 = shalt.err (!%p4614_p10)
}
0x149b   : > { %s5884_s22 = sld [smem:[#allocation61_spill]] }
0x14a1   : > { %s4618_s8 = scalar_lea.hbm %s5884_s22, 32 }
0x14a2   : > { %p4619_p1 = scmp.ne.s32.totalorder %s5884_s22, %s4618_s8  ;;  %p4624_p5 = scmp.lt.u32.totalorder %s4618_s8, %s5884_s22 }
0x14a4   : > { %p4620_p7 = pnand %p4619_p1, %p3935_p13 }
0x14a6   : > { %p4621_p12 = pneg %p4620_p7 }
0x14a8   : > { %p4626_p9 = pnand %p4624_p5, %p4621_p12 }
0x14aa   : > { %4629 = shalt.err (!%p4626_p9)
}
0x14ab   : > { %3865 = dma.vmem_to_hbm [thread:$0]  (%p3935_p13), %s3100_s9, 32, %s5884_s22, [#allocation9]  }
0x14ac   : > { %4677 = dma.done.wait (%p3935_p13), [#allocation9], 32  }
0x14ad   : > { %4679 = vsyncadd (%p3935_p13), [#allocation9], 4294967264 }
0x14ae PF: > { %s37_s29 = sadd.s32 1, %s4702_s29   ;;  %s5885_s3 = sld [smem:[#allocation37_spill]] }
0x14af   : > { %p34_p6 = scmp.ge.s32.totalorder %s37_s29, 5   ;;  %s5886_s2 = sld [smem:[#allocation44_spill]] }
0x14b0   : > { %s5887_s0 = sld [smem:[#allocation43_spill]]  ;;  %s5888_s26 = smov %s4690_s27 }
0x14b1   : > { %s5890_s13 = smov %s4698_s28  ;;  %36 = sbr.rel (!%p34_p6) target bundleno = 30 (0x1e), region = 296 }
0x14b5   : > { %s5889_s27 = smov %s5886_s2 }
0x14b6   : > { %s5891_s28 = smov %s5887_s0 }
0x14b8   :  { %3112 = vsyncpa [#allocation8], 1 }
0x14b9   :  { %3114 = vsyncpa [#allocation8 + $0x1], 1 }
0x14ba   :  { %3115 = vsyncpa [#allocation11], 1 }
0x14bb   :  { %3116 = vsyncpa [#allocation27], 1 }
0x14bc   :  { %3117 = vsyncpa [#allocation9], 1 }
0x14bd   :  { %3119 = vsyncpa [#allocation9 + $0x1], 1 }

</bundles_post_ra>
